<compile_context>
chip_gen: v7x
topology: tpu7x:2x2x1
jax: 0.10.0
libtpu: 0.0.40
codegen_flags: <defaults>
</compile_context>

<pallas_src>
import jax
import jax.numpy as jnp
from jax.experimental import pallas as pl
from jax.experimental.pallas import tpu as pltpu


def lstm_model_kernel(x_ref,                  # (B, T)        raw input series
                      w1_ref, b1_ref,         # (1, H), (1, H)      linear_1
                      W0_ref, b0_ref,         # (2H, 4H), (1, 4H)   LSTM layer 0 (fused ih|hh)
                      W1_ref, bl1_ref,        # (2H, 4H), (1, 4H)   LSTM layer 1 (fused ih|hh)
                      w2_ref, b2_ref,         # (2H, 1), (1, 1)     linear_2
                      o_ref):                 # (B, 1)
    B, T = x_ref.shape
    H = w1_ref.shape[1]

    x = x_ref[...]                            # (B, T), resident in vregs
    w1 = w1_ref[...]                          # (1, H)
    b1 = b1_ref[...]                          # (1, H)
    W0 = W0_ref[...]                          # (2H, 4H)
    b0 = b0_ref[...]                          # (1, 4H)
    W1 = W1_ref[...]
    bl1 = bl1_ref[...]

    def lstm_cell(x_in, h_prev, c_prev, W, bias):
        # Single fused matmul: (B, 2H) @ (2H, 4H) -> (B, 4H), gate order [i,f,g,o]
        xcat = jnp.concatenate([x_in, h_prev], axis=-1)            # (B, 2H)
        gates = jnp.dot(xcat, W, preferred_element_type=jnp.float32) + bias
        # Activations at full vreg width: one sigmoid over the whole 4H tile,
        # one tanh on the g slice -> 2 EUP pushes per cell.
        s = jax.nn.sigmoid(gates)                                  # (B, 4H)
        g = jnp.tanh(gates[:, 2 * H:3 * H])                        # (B, H)
        i = s[:, 0 * H:1 * H]
        f = s[:, 1 * H:2 * H]
        o = s[:, 3 * H:4 * H]
        c_new = f * c_prev + i * g
        h_new = o * jnp.tanh(c_new)
        return h_new, c_new

    zeros = jnp.zeros((B, H), dtype=jnp.float32)
    h0, c0, h1, c1 = zeros, zeros, zeros, zeros

    # Fully unrolled time loop (T static & small). Static indices everywhere;
    # layer-0(t+1) and layer-1(t) are independent, so the scheduler can
    # wavefront the two layer chains (~T+1 dependent matmuls instead of ~2T).
    for t in range(T):
        x_t = x[:, t:t + 1]                                        # (B, 1), static slice
        h_in = jnp.maximum(x_t * w1 + b1, 0.0)                     # linear_1 + ReLU, (B, H)
        h0, c0 = lstm_cell(h_in, h0, c0, W0, b0)                   # layer 0
        h1, c1 = lstm_cell(h0, h1, c1, W1, bl1)                    # layer 1

    # h_n.permute(1,0,2).reshape(B, 2H) == concat([h_layer0, h_layer1], axis=-1)
    feat = jnp.concatenate([h0, h1], axis=-1)                      # (B, 2H)
    # Dropout is identity at inference (model.eval()).
    pred = jnp.dot(feat, w2_ref[...],
                   preferred_element_type=jnp.float32) + b2_ref[...]   # (B, 1)
    o_ref[...] = pred.astype(o_ref.dtype)


def lstm_model_forward(x, params):
    """x: (B, T, 1) float32, batch_first like the PyTorch module. Returns (B,)."""
    B, T, _ = x.shape
    H = params["w1"].shape[1]

    # Drop the trailing size-1 input dim; no transpose needed (kernel slices
    # columns of a (B, T) tile with static indices).
    x2d = x[:, :, 0]                                               # (B, T)

    # Fuse ih/hh weights per layer: (2H, 4H), so each cell is ONE MXU matmul.
    # (In production, precompute these once instead of per call.)
    W0 = jnp.concatenate([params["wih0"], params["whh0"]], axis=0)
    W1 = jnp.concatenate([params["wih1"], params["whh1"]], axis=0)

    vmem = pl.BlockSpec(memory_space=pltpu.MemorySpace.VMEM)
    out = pl.pallas_call(
        lstm_model_kernel,
        out_shape=jax.ShapeDtypeStruct((B, 1), jnp.float32),
        in_specs=[vmem] * 9,
        out_specs=vmem,
        # Total footprint < 100 KB: gridless, everything VMEM-resident.
        # For large deployment batches, add a batch grid axis with
        # dimension_semantics=("parallel",) to use both v7x TensorCores.
    )(x2d,
      params["w1"], params["b1"],
      W0, params["b_l0"],
      W1, params["b_l1"],
      params["w2"], params["b2"])
    # predictions[:, -1] with output_size == 1 -> (B,)
    return out[:, 0]


def init_params(key, input_size=1, hidden=32, output_size=1):
    """Deterministic synthetic init mirroring LSTMModel.__init__/init_weights."""
    H = hidden
    ks = jax.random.split(key, 8)

    def kaiming_normal(k, shape):          # fan_in = shape[1], gain = sqrt(2)
        return jax.random.normal(k, shape, jnp.float32) * jnp.sqrt(2.0 / shape[1])

    def orthogonal(k, shape):
        a = jax.random.normal(k, shape, jnp.float32)
        q, _ = jnp.linalg.qr(a)
        return q[:, :shape[1]]

    # linear_1: PyTorch default uniform(-1/sqrt(fan_in), 1/sqrt(fan_in))
    lim1 = 1.0 / jnp.sqrt(jnp.float32(input_size))
    w1 = jax.random.uniform(ks[0], (input_size, H), jnp.float32, -lim1, lim1)
    b1 = jax.random.uniform(ks[1], (1, H), jnp.float32, -lim1, lim1)

    # LSTM: weight_ih kaiming_normal, weight_hh orthogonal, biases zero
    # (stored transposed as (in, 4H) for the kernel's row-major matmuls;
    #  gate order along the 4H axis is PyTorch's [i, f, g, o])
    wih0 = kaiming_normal(ks[2], (4 * H, H)).T
    whh0 = orthogonal(ks[3], (4 * H, H)).T
    wih1 = kaiming_normal(ks[4], (4 * H, H)).T
    whh1 = orthogonal(ks[5], (4 * H, H)).T
    b_l0 = jnp.zeros((1, 4 * H), jnp.float32)   # b_ih + b_hh, both 0.0
    b_l1 = jnp.zeros((1, 4 * H), jnp.float32)

    # linear_2: fan_in = 2H
    lim2 = 1.0 / jnp.sqrt(jnp.float32(2 * H))
    w2 = jax.random.uniform(ks[6], (2 * H, output_size), jnp.float32, -lim2, lim2)
    b2 = jax.random.uniform(ks[7], (1, output_size), jnp.float32, -lim2, lim2)

    return dict(w1=w1, b1=b1,
                wih0=wih0, whh0=whh0, b_l0=b_l0,
                wih1=wih1, whh1=whh1, b_l1=b_l1,
                w2=w2, b2=b2)


if __name__ == "__main__":
    key = jax.random.PRNGKey(0)
    kx, kp = jax.random.split(key)

    B, T, INPUT, H = 2, 8, 1, 32
    x = jax.random.normal(kx, (B, T, INPUT), dtype=jnp.float32)
    params = init_params(kp, input_size=INPUT, hidden=H, output_size=1)

    pred = lstm_model_forward(x, params)
    jax.block_until_ready(pred)
    assert pred.shape == (B,) and pred.dtype == jnp.float32
    print("KERNEL_OK")
</pallas_src>

<mosaic_0001>
module attributes {stable_mosaic.version = 11 : i64} {
  func.func @lstm_model_kernel(%arg0: memref<2x8xf32, #tpu.memory_space<vmem>>, %arg1: memref<1x32xf32, #tpu.memory_space<vmem>>, %arg2: memref<1x32xf32, #tpu.memory_space<vmem>>, %arg3: memref<64x128xf32, #tpu.memory_space<vmem>>, %arg4: memref<1x128xf32, #tpu.memory_space<vmem>>, %arg5: memref<64x128xf32, #tpu.memory_space<vmem>>, %arg6: memref<1x128xf32, #tpu.memory_space<vmem>>, %arg7: memref<64x1xf32, #tpu.memory_space<vmem>>, %arg8: memref<1x1xf32, #tpu.memory_space<vmem>>, %arg9: memref<2x1xf32, #tpu.memory_space<vmem>>) attributes {dimension_semantics = [], scalar_prefetch = 0 : i64, scratch_operands = 0 : i64, tpu.core_type = #tpu.core_type<tc>} {
    %c0 = arith.constant 0 : index
    %c0_0 = arith.constant 0 : index
    %0 = vector.load %arg0[%c0, %c0_0] : memref<2x8xf32, #tpu.memory_space<vmem>>, vector<2x8xf32>
    %c0_1 = arith.constant 0 : index
    %c0_2 = arith.constant 0 : index
    %1 = vector.load %arg1[%c0_1, %c0_2] : memref<1x32xf32, #tpu.memory_space<vmem>>, vector<1x32xf32>
    %c0_3 = arith.constant 0 : index
    %c0_4 = arith.constant 0 : index
    %2 = vector.load %arg2[%c0_3, %c0_4] : memref<1x32xf32, #tpu.memory_space<vmem>>, vector<1x32xf32>
    %c0_5 = arith.constant 0 : index
    %c0_6 = arith.constant 0 : index
    %3 = vector.load %arg3[%c0_5, %c0_6] : memref<64x128xf32, #tpu.memory_space<vmem>>, vector<64x128xf32>
    %c0_7 = arith.constant 0 : index
    %c0_8 = arith.constant 0 : index
    %4 = vector.load %arg4[%c0_7, %c0_8] : memref<1x128xf32, #tpu.memory_space<vmem>>, vector<1x128xf32>
    %c0_9 = arith.constant 0 : index
    %c0_10 = arith.constant 0 : index
    %5 = vector.load %arg5[%c0_9, %c0_10] : memref<64x128xf32, #tpu.memory_space<vmem>>, vector<64x128xf32>
    %c0_11 = arith.constant 0 : index
    %c0_12 = arith.constant 0 : index
    %6 = vector.load %arg6[%c0_11, %c0_12] : memref<1x128xf32, #tpu.memory_space<vmem>>, vector<1x128xf32>
    %cst = arith.constant 0.000000e+00 : f32
    %7 = vector.broadcast %cst : f32 to vector<2x32xf32>
    %8 = vector.extract_strided_slice %0 {offsets = [0, 0], sizes = [2, 1], strides = [1, 1]} : vector<2x8xf32> to vector<2x1xf32>
    %9 = vector.broadcast %8 : vector<2x1xf32> to vector<2x32xf32>
    %10 = vector.broadcast %1 : vector<1x32xf32> to vector<2x32xf32>
    %11 = arith.mulf %9, %10 : vector<2x32xf32>
    %12 = vector.broadcast %2 : vector<1x32xf32> to vector<2x32xf32>
    %13 = arith.addf %11, %12 : vector<2x32xf32>
    %cst_13 = arith.constant 0.000000e+00 : f32
    %14 = vector.broadcast %cst_13 : f32 to vector<2x32xf32>
    %15 = arith.maximumf %13, %14 : vector<2x32xf32>
    %16 = tpu.concatenate %15, %7 in 1 : vector<2x32xf32>, vector<2x32xf32> -> vector<2x64xf32>
    %cst_14 = arith.constant dense<0.000000e+00> : vector<2x128xf32>
    %17 = tpu.matmul %16, %3, %cst_14 {dimension_numbers = #tpu.dot_dimension_numbers<[1], [0], [0], [1], [0, 0, 1, 1], [], []>} : vector<2x64xf32>, vector<64x128xf32>, vector<2x128xf32> -> vector<2x128xf32>
    %18 = vector.broadcast %4 : vector<1x128xf32> to vector<2x128xf32>
    %19 = arith.addf %17, %18 : vector<2x128xf32>
    %20 = arith.negf %19 : vector<2x128xf32>
    %21 = math.exp %20 : vector<2x128xf32>
    %cst_15 = arith.constant 1.000000e+00 : f32
    %22 = vector.broadcast %cst_15 : f32 to vector<2x128xf32>
    %23 = arith.addf %22, %21 : vector<2x128xf32>
    %24 = arith.divf %22, %23 : vector<2x128xf32>
    %25 = vector.extract_strided_slice %19 {offsets = [0, 64], sizes = [2, 32], strides = [1, 1]} : vector<2x128xf32> to vector<2x32xf32>
    %26 = math.tanh %25 : vector<2x32xf32>
    %27 = vector.extract_strided_slice %24 {offsets = [0, 0], sizes = [2, 32], strides = [1, 1]} : vector<2x128xf32> to vector<2x32xf32>
    %28 = vector.extract_strided_slice %24 {offsets = [0, 32], sizes = [2, 32], strides = [1, 1]} : vector<2x128xf32> to vector<2x32xf32>
    %29 = vector.extract_strided_slice %24 {offsets = [0, 96], sizes = [2, 32], strides = [1, 1]} : vector<2x128xf32> to vector<2x32xf32>
    %30 = arith.mulf %28, %7 : vector<2x32xf32>
    %31 = arith.mulf %27, %26 : vector<2x32xf32>
    %32 = arith.addf %30, %31 : vector<2x32xf32>
    %33 = math.tanh %32 : vector<2x32xf32>
    %34 = arith.mulf %29, %33 : vector<2x32xf32>
    %35 = tpu.concatenate %34, %7 in 1 : vector<2x32xf32>, vector<2x32xf32> -> vector<2x64xf32>
    %cst_16 = arith.constant dense<0.000000e+00> : vector<2x128xf32>
    %36 = tpu.matmul %35, %5, %cst_16 {dimension_numbers = #tpu.dot_dimension_numbers<[1], [0], [0], [1], [0, 0, 1, 1], [], []>} : vector<2x64xf32>, vector<64x128xf32>, vector<2x128xf32> -> vector<2x128xf32>
    %37 = vector.broadcast %6 : vector<1x128xf32> to vector<2x128xf32>
    %38 = arith.addf %36, %37 : vector<2x128xf32>
    %39 = arith.negf %38 : vector<2x128xf32>
    %40 = math.exp %39 : vector<2x128xf32>
    %cst_17 = arith.constant 1.000000e+00 : f32
    %41 = vector.broadcast %cst_17 : f32 to vector<2x128xf32>
    %42 = arith.addf %41, %40 : vector<2x128xf32>
    %43 = arith.divf %41, %42 : vector<2x128xf32>
    %44 = vector.extract_strided_slice %38 {offsets = [0, 64], sizes = [2, 32], strides = [1, 1]} : vector<2x128xf32> to vector<2x32xf32>
    %45 = math.tanh %44 : vector<2x32xf32>
    %46 = vector.extract_strided_slice %43 {offsets = [0, 0], sizes = [2, 32], strides = [1, 1]} : vector<2x128xf32> to vector<2x32xf32>
    %47 = vector.extract_strided_slice %43 {offsets = [0, 32], sizes = [2, 32], strides = [1, 1]} : vector<2x128xf32> to vector<2x32xf32>
    %48 = vector.extract_strided_slice %43 {offsets = [0, 96], sizes = [2, 32], strides = [1, 1]} : vector<2x128xf32> to vector<2x32xf32>
    %49 = arith.mulf %47, %7 : vector<2x32xf32>
    %50 = arith.mulf %46, %45 : vector<2x32xf32>
    %51 = arith.addf %49, %50 : vector<2x32xf32>
    %52 = math.tanh %51 : vector<2x32xf32>
    %53 = arith.mulf %48, %52 : vector<2x32xf32>
    %54 = vector.extract_strided_slice %0 {offsets = [0, 1], sizes = [2, 1], strides = [1, 1]} : vector<2x8xf32> to vector<2x1xf32>
    %55 = vector.broadcast %54 : vector<2x1xf32> to vector<2x32xf32>
    %56 = vector.broadcast %1 : vector<1x32xf32> to vector<2x32xf32>
    %57 = arith.mulf %55, %56 : vector<2x32xf32>
    %58 = vector.broadcast %2 : vector<1x32xf32> to vector<2x32xf32>
    %59 = arith.addf %57, %58 : vector<2x32xf32>
    %cst_18 = arith.constant 0.000000e+00 : f32
    %60 = vector.broadcast %cst_18 : f32 to vector<2x32xf32>
    %61 = arith.maximumf %59, %60 : vector<2x32xf32>
    %62 = tpu.concatenate %61, %34 in 1 : vector<2x32xf32>, vector<2x32xf32> -> vector<2x64xf32>
    %cst_19 = arith.constant dense<0.000000e+00> : vector<2x128xf32>
    %63 = tpu.matmul %62, %3, %cst_19 {dimension_numbers = #tpu.dot_dimension_numbers<[1], [0], [0], [1], [0, 0, 1, 1], [], []>} : vector<2x64xf32>, vector<64x128xf32>, vector<2x128xf32> -> vector<2x128xf32>
    %64 = vector.broadcast %4 : vector<1x128xf32> to vector<2x128xf32>
    %65 = arith.addf %63, %64 : vector<2x128xf32>
    %66 = arith.negf %65 : vector<2x128xf32>
    %67 = math.exp %66 : vector<2x128xf32>
    %cst_20 = arith.constant 1.000000e+00 : f32
    %68 = vector.broadcast %cst_20 : f32 to vector<2x128xf32>
    %69 = arith.addf %68, %67 : vector<2x128xf32>
    %70 = arith.divf %68, %69 : vector<2x128xf32>
    %71 = vector.extract_strided_slice %65 {offsets = [0, 64], sizes = [2, 32], strides = [1, 1]} : vector<2x128xf32> to vector<2x32xf32>
    %72 = math.tanh %71 : vector<2x32xf32>
    %73 = vector.extract_strided_slice %70 {offsets = [0, 0], sizes = [2, 32], strides = [1, 1]} : vector<2x128xf32> to vector<2x32xf32>
    %74 = vector.extract_strided_slice %70 {offsets = [0, 32], sizes = [2, 32], strides = [1, 1]} : vector<2x128xf32> to vector<2x32xf32>
    %75 = vector.extract_strided_slice %70 {offsets = [0, 96], sizes = [2, 32], strides = [1, 1]} : vector<2x128xf32> to vector<2x32xf32>
    %76 = arith.mulf %74, %32 : vector<2x32xf32>
    %77 = arith.mulf %73, %72 : vector<2x32xf32>
    %78 = arith.addf %76, %77 : vector<2x32xf32>
    %79 = math.tanh %78 : vector<2x32xf32>
    %80 = arith.mulf %75, %79 : vector<2x32xf32>
    %81 = tpu.concatenate %80, %53 in 1 : vector<2x32xf32>, vector<2x32xf32> -> vector<2x64xf32>
    %cst_21 = arith.constant dense<0.000000e+00> : vector<2x128xf32>
    %82 = tpu.matmul %81, %5, %cst_21 {dimension_numbers = #tpu.dot_dimension_numbers<[1], [0], [0], [1], [0, 0, 1, 1], [], []>} : vector<2x64xf32>, vector<64x128xf32>, vector<2x128xf32> -> vector<2x128xf32>
    %83 = vector.broadcast %6 : vector<1x128xf32> to vector<2x128xf32>
    %84 = arith.addf %82, %83 : vector<2x128xf32>
    %85 = arith.negf %84 : vector<2x128xf32>
    %86 = math.exp %85 : vector<2x128xf32>
    %cst_22 = arith.constant 1.000000e+00 : f32
    %87 = vector.broadcast %cst_22 : f32 to vector<2x128xf32>
    %88 = arith.addf %87, %86 : vector<2x128xf32>
    %89 = arith.divf %87, %88 : vector<2x128xf32>
    %90 = vector.extract_strided_slice %84 {offsets = [0, 64], sizes = [2, 32], strides = [1, 1]} : vector<2x128xf32> to vector<2x32xf32>
    %91 = math.tanh %90 : vector<2x32xf32>
    %92 = vector.extract_strided_slice %89 {offsets = [0, 0], sizes = [2, 32], strides = [1, 1]} : vector<2x128xf32> to vector<2x32xf32>
    %93 = vector.extract_strided_slice %89 {offsets = [0, 32], sizes = [2, 32], strides = [1, 1]} : vector<2x128xf32> to vector<2x32xf32>
    %94 = vector.extract_strided_slice %89 {offsets = [0, 96], sizes = [2, 32], strides = [1, 1]} : vector<2x128xf32> to vector<2x32xf32>
    %95 = arith.mulf %93, %51 : vector<2x32xf32>
    %96 = arith.mulf %92, %91 : vector<2x32xf32>
    %97 = arith.addf %95, %96 : vector<2x32xf32>
    %98 = math.tanh %97 : vector<2x32xf32>
    %99 = arith.mulf %94, %98 : vector<2x32xf32>
    %100 = vector.extract_strided_slice %0 {offsets = [0, 2], sizes = [2, 1], strides = [1, 1]} : vector<2x8xf32> to vector<2x1xf32>
    %101 = vector.broadcast %100 : vector<2x1xf32> to vector<2x32xf32>
    %102 = vector.broadcast %1 : vector<1x32xf32> to vector<2x32xf32>
    %103 = arith.mulf %101, %102 : vector<2x32xf32>
    %104 = vector.broadcast %2 : vector<1x32xf32> to vector<2x32xf32>
    %105 = arith.addf %103, %104 : vector<2x32xf32>
    %cst_23 = arith.constant 0.000000e+00 : f32
    %106 = vector.broadcast %cst_23 : f32 to vector<2x32xf32>
    %107 = arith.maximumf %105, %106 : vector<2x32xf32>
    %108 = tpu.concatenate %107, %80 in 1 : vector<2x32xf32>, vector<2x32xf32> -> vector<2x64xf32>
    %cst_24 = arith.constant dense<0.000000e+00> : vector<2x128xf32>
    %109 = tpu.matmul %108, %3, %cst_24 {dimension_numbers = #tpu.dot_dimension_numbers<[1], [0], [0], [1], [0, 0, 1, 1], [], []>} : vector<2x64xf32>, vector<64x128xf32>, vector<2x128xf32> -> vector<2x128xf32>
    %110 = vector.broadcast %4 : vector<1x128xf32> to vector<2x128xf32>
    %111 = arith.addf %109, %110 : vector<2x128xf32>
    %112 = arith.negf %111 : vector<2x128xf32>
    %113 = math.exp %112 : vector<2x128xf32>
    %cst_25 = arith.constant 1.000000e+00 : f32
    %114 = vector.broadcast %cst_25 : f32 to vector<2x128xf32>
    %115 = arith.addf %114, %113 : vector<2x128xf32>
    %116 = arith.divf %114, %115 : vector<2x128xf32>
    %117 = vector.extract_strided_slice %111 {offsets = [0, 64], sizes = [2, 32], strides = [1, 1]} : vector<2x128xf32> to vector<2x32xf32>
    %118 = math.tanh %117 : vector<2x32xf32>
    %119 = vector.extract_strided_slice %116 {offsets = [0, 0], sizes = [2, 32], strides = [1, 1]} : vector<2x128xf32> to vector<2x32xf32>
    %120 = vector.extract_strided_slice %116 {offsets = [0, 32], sizes = [2, 32], strides = [1, 1]} : vector<2x128xf32> to vector<2x32xf32>
    %121 = vector.extract_strided_slice %116 {offsets = [0, 96], sizes = [2, 32], strides = [1, 1]} : vector<2x128xf32> to vector<2x32xf32>
    %122 = arith.mulf %120, %78 : vector<2x32xf32>
    %123 = arith.mulf %119, %118 : vector<2x32xf32>
    %124 = arith.addf %122, %123 : vector<2x32xf32>
    %125 = math.tanh %124 : vector<2x32xf32>
    %126 = arith.mulf %121, %125 : vector<2x32xf32>
    %127 = tpu.concatenate %126, %99 in 1 : vector<2x32xf32>, vector<2x32xf32> -> vector<2x64xf32>
    %cst_26 = arith.constant dense<0.000000e+00> : vector<2x128xf32>
    %128 = tpu.matmul %127, %5, %cst_26 {dimension_numbers = #tpu.dot_dimension_numbers<[1], [0], [0], [1], [0, 0, 1, 1], [], []>} : vector<2x64xf32>, vector<64x128xf32>, vector<2x128xf32> -> vector<2x128xf32>
    %129 = vector.broadcast %6 : vector<1x128xf32> to vector<2x128xf32>
    %130 = arith.addf %128, %129 : vector<2x128xf32>
    %131 = arith.negf %130 : vector<2x128xf32>
    %132 = math.exp %131 : vector<2x128xf32>
    %cst_27 = arith.constant 1.000000e+00 : f32
    %133 = vector.broadcast %cst_27 : f32 to vector<2x128xf32>
    %134 = arith.addf %133, %132 : vector<2x128xf32>
    %135 = arith.divf %133, %134 : vector<2x128xf32>
    %136 = vector.extract_strided_slice %130 {offsets = [0, 64], sizes = [2, 32], strides = [1, 1]} : vector<2x128xf32> to vector<2x32xf32>
    %137 = math.tanh %136 : vector<2x32xf32>
    %138 = vector.extract_strided_slice %135 {offsets = [0, 0], sizes = [2, 32], strides = [1, 1]} : vector<2x128xf32> to vector<2x32xf32>
    %139 = vector.extract_strided_slice %135 {offsets = [0, 32], sizes = [2, 32], strides = [1, 1]} : vector<2x128xf32> to vector<2x32xf32>
    %140 = vector.extract_strided_slice %135 {offsets = [0, 96], sizes = [2, 32], strides = [1, 1]} : vector<2x128xf32> to vector<2x32xf32>
    %141 = arith.mulf %139, %97 : vector<2x32xf32>
    %142 = arith.mulf %138, %137 : vector<2x32xf32>
    %143 = arith.addf %141, %142 : vector<2x32xf32>
    %144 = math.tanh %143 : vector<2x32xf32>
    %145 = arith.mulf %140, %144 : vector<2x32xf32>
    %146 = vector.extract_strided_slice %0 {offsets = [0, 3], sizes = [2, 1], strides = [1, 1]} : vector<2x8xf32> to vector<2x1xf32>
    %147 = vector.broadcast %146 : vector<2x1xf32> to vector<2x32xf32>
    %148 = vector.broadcast %1 : vector<1x32xf32> to vector<2x32xf32>
    %149 = arith.mulf %147, %148 : vector<2x32xf32>
    %150 = vector.broadcast %2 : vector<1x32xf32> to vector<2x32xf32>
    %151 = arith.addf %149, %150 : vector<2x32xf32>
    %cst_28 = arith.constant 0.000000e+00 : f32
    %152 = vector.broadcast %cst_28 : f32 to vector<2x32xf32>
    %153 = arith.maximumf %151, %152 : vector<2x32xf32>
    %154 = tpu.concatenate %153, %126 in 1 : vector<2x32xf32>, vector<2x32xf32> -> vector<2x64xf32>
    %cst_29 = arith.constant dense<0.000000e+00> : vector<2x128xf32>
    %155 = tpu.matmul %154, %3, %cst_29 {dimension_numbers = #tpu.dot_dimension_numbers<[1], [0], [0], [1], [0, 0, 1, 1], [], []>} : vector<2x64xf32>, vector<64x128xf32>, vector<2x128xf32> -> vector<2x128xf32>
    %156 = vector.broadcast %4 : vector<1x128xf32> to vector<2x128xf32>
    %157 = arith.addf %155, %156 : vector<2x128xf32>
    %158 = arith.negf %157 : vector<2x128xf32>
    %159 = math.exp %158 : vector<2x128xf32>
    %cst_30 = arith.constant 1.000000e+00 : f32
    %160 = vector.broadcast %cst_30 : f32 to vector<2x128xf32>
    %161 = arith.addf %160, %159 : vector<2x128xf32>
    %162 = arith.divf %160, %161 : vector<2x128xf32>
    %163 = vector.extract_strided_slice %157 {offsets = [0, 64], sizes = [2, 32], strides = [1, 1]} : vector<2x128xf32> to vector<2x32xf32>
    %164 = math.tanh %163 : vector<2x32xf32>
    %165 = vector.extract_strided_slice %162 {offsets = [0, 0], sizes = [2, 32], strides = [1, 1]} : vector<2x128xf32> to vector<2x32xf32>
    %166 = vector.extract_strided_slice %162 {offsets = [0, 32], sizes = [2, 32], strides = [1, 1]} : vector<2x128xf32> to vector<2x32xf32>
    %167 = vector.extract_strided_slice %162 {offsets = [0, 96], sizes = [2, 32], strides = [1, 1]} : vector<2x128xf32> to vector<2x32xf32>
    %168 = arith.mulf %166, %124 : vector<2x32xf32>
    %169 = arith.mulf %165, %164 : vector<2x32xf32>
    %170 = arith.addf %168, %169 : vector<2x32xf32>
    %171 = math.tanh %170 : vector<2x32xf32>
    %172 = arith.mulf %167, %171 : vector<2x32xf32>
    %173 = tpu.concatenate %172, %145 in 1 : vector<2x32xf32>, vector<2x32xf32> -> vector<2x64xf32>
    %cst_31 = arith.constant dense<0.000000e+00> : vector<2x128xf32>
    %174 = tpu.matmul %173, %5, %cst_31 {dimension_numbers = #tpu.dot_dimension_numbers<[1], [0], [0], [1], [0, 0, 1, 1], [], []>} : vector<2x64xf32>, vector<64x128xf32>, vector<2x128xf32> -> vector<2x128xf32>
    %175 = vector.broadcast %6 : vector<1x128xf32> to vector<2x128xf32>
    %176 = arith.addf %174, %175 : vector<2x128xf32>
    %177 = arith.negf %176 : vector<2x128xf32>
    %178 = math.exp %177 : vector<2x128xf32>
    %cst_32 = arith.constant 1.000000e+00 : f32
    %179 = vector.broadcast %cst_32 : f32 to vector<2x128xf32>
    %180 = arith.addf %179, %178 : vector<2x128xf32>
    %181 = arith.divf %179, %180 : vector<2x128xf32>
    %182 = vector.extract_strided_slice %176 {offsets = [0, 64], sizes = [2, 32], strides = [1, 1]} : vector<2x128xf32> to vector<2x32xf32>
    %183 = math.tanh %182 : vector<2x32xf32>
    %184 = vector.extract_strided_slice %181 {offsets = [0, 0], sizes = [2, 32], strides = [1, 1]} : vector<2x128xf32> to vector<2x32xf32>
    %185 = vector.extract_strided_slice %181 {offsets = [0, 32], sizes = [2, 32], strides = [1, 1]} : vector<2x128xf32> to vector<2x32xf32>
    %186 = vector.extract_strided_slice %181 {offsets = [0, 96], sizes = [2, 32], strides = [1, 1]} : vector<2x128xf32> to vector<2x32xf32>
    %187 = arith.mulf %185, %143 : vector<2x32xf32>
    %188 = arith.mulf %184, %183 : vector<2x32xf32>
    %189 = arith.addf %187, %188 : vector<2x32xf32>
    %190 = math.tanh %189 : vector<2x32xf32>
    %191 = arith.mulf %186, %190 : vector<2x32xf32>
    %192 = vector.extract_strided_slice %0 {offsets = [0, 4], sizes = [2, 1], strides = [1, 1]} : vector<2x8xf32> to vector<2x1xf32>
    %193 = vector.broadcast %192 : vector<2x1xf32> to vector<2x32xf32>
    %194 = vector.broadcast %1 : vector<1x32xf32> to vector<2x32xf32>
    %195 = arith.mulf %193, %194 : vector<2x32xf32>
    %196 = vector.broadcast %2 : vector<1x32xf32> to vector<2x32xf32>
    %197 = arith.addf %195, %196 : vector<2x32xf32>
    %cst_33 = arith.constant 0.000000e+00 : f32
    %198 = vector.broadcast %cst_33 : f32 to vector<2x32xf32>
    %199 = arith.maximumf %197, %198 : vector<2x32xf32>
    %200 = tpu.concatenate %199, %172 in 1 : vector<2x32xf32>, vector<2x32xf32> -> vector<2x64xf32>
    %cst_34 = arith.constant dense<0.000000e+00> : vector<2x128xf32>
    %201 = tpu.matmul %200, %3, %cst_34 {dimension_numbers = #tpu.dot_dimension_numbers<[1], [0], [0], [1], [0, 0, 1, 1], [], []>} : vector<2x64xf32>, vector<64x128xf32>, vector<2x128xf32> -> vector<2x128xf32>
    %202 = vector.broadcast %4 : vector<1x128xf32> to vector<2x128xf32>
    %203 = arith.addf %201, %202 : vector<2x128xf32>
    %204 = arith.negf %203 : vector<2x128xf32>
    %205 = math.exp %204 : vector<2x128xf32>
    %cst_35 = arith.constant 1.000000e+00 : f32
    %206 = vector.broadcast %cst_35 : f32 to vector<2x128xf32>
    %207 = arith.addf %206, %205 : vector<2x128xf32>
    %208 = arith.divf %206, %207 : vector<2x128xf32>
    %209 = vector.extract_strided_slice %203 {offsets = [0, 64], sizes = [2, 32], strides = [1, 1]} : vector<2x128xf32> to vector<2x32xf32>
    %210 = math.tanh %209 : vector<2x32xf32>
    %211 = vector.extract_strided_slice %208 {offsets = [0, 0], sizes = [2, 32], strides = [1, 1]} : vector<2x128xf32> to vector<2x32xf32>
    %212 = vector.extract_strided_slice %208 {offsets = [0, 32], sizes = [2, 32], strides = [1, 1]} : vector<2x128xf32> to vector<2x32xf32>
    %213 = vector.extract_strided_slice %208 {offsets = [0, 96], sizes = [2, 32], strides = [1, 1]} : vector<2x128xf32> to vector<2x32xf32>
    %214 = arith.mulf %212, %170 : vector<2x32xf32>
    %215 = arith.mulf %211, %210 : vector<2x32xf32>
    %216 = arith.addf %214, %215 : vector<2x32xf32>
    %217 = math.tanh %216 : vector<2x32xf32>
    %218 = arith.mulf %213, %217 : vector<2x32xf32>
    %219 = tpu.concatenate %218, %191 in 1 : vector<2x32xf32>, vector<2x32xf32> -> vector<2x64xf32>
    %cst_36 = arith.constant dense<0.000000e+00> : vector<2x128xf32>
    %220 = tpu.matmul %219, %5, %cst_36 {dimension_numbers = #tpu.dot_dimension_numbers<[1], [0], [0], [1], [0, 0, 1, 1], [], []>} : vector<2x64xf32>, vector<64x128xf32>, vector<2x128xf32> -> vector<2x128xf32>
    %221 = vector.broadcast %6 : vector<1x128xf32> to vector<2x128xf32>
    %222 = arith.addf %220, %221 : vector<2x128xf32>
    %223 = arith.negf %222 : vector<2x128xf32>
    %224 = math.exp %223 : vector<2x128xf32>
    %cst_37 = arith.constant 1.000000e+00 : f32
    %225 = vector.broadcast %cst_37 : f32 to vector<2x128xf32>
    %226 = arith.addf %225, %224 : vector<2x128xf32>
    %227 = arith.divf %225, %226 : vector<2x128xf32>
    %228 = vector.extract_strided_slice %222 {offsets = [0, 64], sizes = [2, 32], strides = [1, 1]} : vector<2x128xf32> to vector<2x32xf32>
    %229 = math.tanh %228 : vector<2x32xf32>
    %230 = vector.extract_strided_slice %227 {offsets = [0, 0], sizes = [2, 32], strides = [1, 1]} : vector<2x128xf32> to vector<2x32xf32>
    %231 = vector.extract_strided_slice %227 {offsets = [0, 32], sizes = [2, 32], strides = [1, 1]} : vector<2x128xf32> to vector<2x32xf32>
    %232 = vector.extract_strided_slice %227 {offsets = [0, 96], sizes = [2, 32], strides = [1, 1]} : vector<2x128xf32> to vector<2x32xf32>
    %233 = arith.mulf %231, %189 : vector<2x32xf32>
    %234 = arith.mulf %230, %229 : vector<2x32xf32>
    %235 = arith.addf %233, %234 : vector<2x32xf32>
    %236 = math.tanh %235 : vector<2x32xf32>
    %237 = arith.mulf %232, %236 : vector<2x32xf32>
    %238 = vector.extract_strided_slice %0 {offsets = [0, 5], sizes = [2, 1], strides = [1, 1]} : vector<2x8xf32> to vector<2x1xf32>
    %239 = vector.broadcast %238 : vector<2x1xf32> to vector<2x32xf32>
    %240 = vector.broadcast %1 : vector<1x32xf32> to vector<2x32xf32>
    %241 = arith.mulf %239, %240 : vector<2x32xf32>
    %242 = vector.broadcast %2 : vector<1x32xf32> to vector<2x32xf32>
    %243 = arith.addf %241, %242 : vector<2x32xf32>
    %cst_38 = arith.constant 0.000000e+00 : f32
    %244 = vector.broadcast %cst_38 : f32 to vector<2x32xf32>
    %245 = arith.maximumf %243, %244 : vector<2x32xf32>
    %246 = tpu.concatenate %245, %218 in 1 : vector<2x32xf32>, vector<2x32xf32> -> vector<2x64xf32>
    %cst_39 = arith.constant dense<0.000000e+00> : vector<2x128xf32>
    %247 = tpu.matmul %246, %3, %cst_39 {dimension_numbers = #tpu.dot_dimension_numbers<[1], [0], [0], [1], [0, 0, 1, 1], [], []>} : vector<2x64xf32>, vector<64x128xf32>, vector<2x128xf32> -> vector<2x128xf32>
    %248 = vector.broadcast %4 : vector<1x128xf32> to vector<2x128xf32>
    %249 = arith.addf %247, %248 : vector<2x128xf32>
    %250 = arith.negf %249 : vector<2x128xf32>
    %251 = math.exp %250 : vector<2x128xf32>
    %cst_40 = arith.constant 1.000000e+00 : f32
    %252 = vector.broadcast %cst_40 : f32 to vector<2x128xf32>
    %253 = arith.addf %252, %251 : vector<2x128xf32>
    %254 = arith.divf %252, %253 : vector<2x128xf32>
    %255 = vector.extract_strided_slice %249 {offsets = [0, 64], sizes = [2, 32], strides = [1, 1]} : vector<2x128xf32> to vector<2x32xf32>
    %256 = math.tanh %255 : vector<2x32xf32>
    %257 = vector.extract_strided_slice %254 {offsets = [0, 0], sizes = [2, 32], strides = [1, 1]} : vector<2x128xf32> to vector<2x32xf32>
    %258 = vector.extract_strided_slice %254 {offsets = [0, 32], sizes = [2, 32], strides = [1, 1]} : vector<2x128xf32> to vector<2x32xf32>
    %259 = vector.extract_strided_slice %254 {offsets = [0, 96], sizes = [2, 32], strides = [1, 1]} : vector<2x128xf32> to vector<2x32xf32>
    %260 = arith.mulf %258, %216 : vector<2x32xf32>
    %261 = arith.mulf %257, %256 : vector<2x32xf32>
    %262 = arith.addf %260, %261 : vector<2x32xf32>
    %263 = math.tanh %262 : vector<2x32xf32>
    %264 = arith.mulf %259, %263 : vector<2x32xf32>
    %265 = tpu.concatenate %264, %237 in 1 : vector<2x32xf32>, vector<2x32xf32> -> vector<2x64xf32>
    %cst_41 = arith.constant dense<0.000000e+00> : vector<2x128xf32>
    %266 = tpu.matmul %265, %5, %cst_41 {dimension_numbers = #tpu.dot_dimension_numbers<[1], [0], [0], [1], [0, 0, 1, 1], [], []>} : vector<2x64xf32>, vector<64x128xf32>, vector<2x128xf32> -> vector<2x128xf32>
    %267 = vector.broadcast %6 : vector<1x128xf32> to vector<2x128xf32>
    %268 = arith.addf %266, %267 : vector<2x128xf32>
    %269 = arith.negf %268 : vector<2x128xf32>
    %270 = math.exp %269 : vector<2x128xf32>
    %cst_42 = arith.constant 1.000000e+00 : f32
    %271 = vector.broadcast %cst_42 : f32 to vector<2x128xf32>
    %272 = arith.addf %271, %270 : vector<2x128xf32>
    %273 = arith.divf %271, %272 : vector<2x128xf32>
    %274 = vector.extract_strided_slice %268 {offsets = [0, 64], sizes = [2, 32], strides = [1, 1]} : vector<2x128xf32> to vector<2x32xf32>
    %275 = math.tanh %274 : vector<2x32xf32>
    %276 = vector.extract_strided_slice %273 {offsets = [0, 0], sizes = [2, 32], strides = [1, 1]} : vector<2x128xf32> to vector<2x32xf32>
    %277 = vector.extract_strided_slice %273 {offsets = [0, 32], sizes = [2, 32], strides = [1, 1]} : vector<2x128xf32> to vector<2x32xf32>
    %278 = vector.extract_strided_slice %273 {offsets = [0, 96], sizes = [2, 32], strides = [1, 1]} : vector<2x128xf32> to vector<2x32xf32>
    %279 = arith.mulf %277, %235 : vector<2x32xf32>
    %280 = arith.mulf %276, %275 : vector<2x32xf32>
    %281 = arith.addf %279, %280 : vector<2x32xf32>
    %282 = math.tanh %281 : vector<2x32xf32>
    %283 = arith.mulf %278, %282 : vector<2x32xf32>
    %284 = vector.extract_strided_slice %0 {offsets = [0, 6], sizes = [2, 1], strides = [1, 1]} : vector<2x8xf32> to vector<2x1xf32>
    %285 = vector.broadcast %284 : vector<2x1xf32> to vector<2x32xf32>
    %286 = vector.broadcast %1 : vector<1x32xf32> to vector<2x32xf32>
    %287 = arith.mulf %285, %286 : vector<2x32xf32>
    %288 = vector.broadcast %2 : vector<1x32xf32> to vector<2x32xf32>
    %289 = arith.addf %287, %288 : vector<2x32xf32>
    %cst_43 = arith.constant 0.000000e+00 : f32
    %290 = vector.broadcast %cst_43 : f32 to vector<2x32xf32>
    %291 = arith.maximumf %289, %290 : vector<2x32xf32>
    %292 = tpu.concatenate %291, %264 in 1 : vector<2x32xf32>, vector<2x32xf32> -> vector<2x64xf32>
    %cst_44 = arith.constant dense<0.000000e+00> : vector<2x128xf32>
    %293 = tpu.matmul %292, %3, %cst_44 {dimension_numbers = #tpu.dot_dimension_numbers<[1], [0], [0], [1], [0, 0, 1, 1], [], []>} : vector<2x64xf32>, vector<64x128xf32>, vector<2x128xf32> -> vector<2x128xf32>
    %294 = vector.broadcast %4 : vector<1x128xf32> to vector<2x128xf32>
    %295 = arith.addf %293, %294 : vector<2x128xf32>
    %296 = arith.negf %295 : vector<2x128xf32>
    %297 = math.exp %296 : vector<2x128xf32>
    %cst_45 = arith.constant 1.000000e+00 : f32
    %298 = vector.broadcast %cst_45 : f32 to vector<2x128xf32>
    %299 = arith.addf %298, %297 : vector<2x128xf32>
    %300 = arith.divf %298, %299 : vector<2x128xf32>
    %301 = vector.extract_strided_slice %295 {offsets = [0, 64], sizes = [2, 32], strides = [1, 1]} : vector<2x128xf32> to vector<2x32xf32>
    %302 = math.tanh %301 : vector<2x32xf32>
    %303 = vector.extract_strided_slice %300 {offsets = [0, 0], sizes = [2, 32], strides = [1, 1]} : vector<2x128xf32> to vector<2x32xf32>
    %304 = vector.extract_strided_slice %300 {offsets = [0, 32], sizes = [2, 32], strides = [1, 1]} : vector<2x128xf32> to vector<2x32xf32>
    %305 = vector.extract_strided_slice %300 {offsets = [0, 96], sizes = [2, 32], strides = [1, 1]} : vector<2x128xf32> to vector<2x32xf32>
    %306 = arith.mulf %304, %262 : vector<2x32xf32>
    %307 = arith.mulf %303, %302 : vector<2x32xf32>
    %308 = arith.addf %306, %307 : vector<2x32xf32>
    %309 = math.tanh %308 : vector<2x32xf32>
    %310 = arith.mulf %305, %309 : vector<2x32xf32>
    %311 = tpu.concatenate %310, %283 in 1 : vector<2x32xf32>, vector<2x32xf32> -> vector<2x64xf32>
    %cst_46 = arith.constant dense<0.000000e+00> : vector<2x128xf32>
    %312 = tpu.matmul %311, %5, %cst_46 {dimension_numbers = #tpu.dot_dimension_numbers<[1], [0], [0], [1], [0, 0, 1, 1], [], []>} : vector<2x64xf32>, vector<64x128xf32>, vector<2x128xf32> -> vector<2x128xf32>
    %313 = vector.broadcast %6 : vector<1x128xf32> to vector<2x128xf32>
    %314 = arith.addf %312, %313 : vector<2x128xf32>
    %315 = arith.negf %314 : vector<2x128xf32>
    %316 = math.exp %315 : vector<2x128xf32>
    %cst_47 = arith.constant 1.000000e+00 : f32
    %317 = vector.broadcast %cst_47 : f32 to vector<2x128xf32>
    %318 = arith.addf %317, %316 : vector<2x128xf32>
    %319 = arith.divf %317, %318 : vector<2x128xf32>
    %320 = vector.extract_strided_slice %314 {offsets = [0, 64], sizes = [2, 32], strides = [1, 1]} : vector<2x128xf32> to vector<2x32xf32>
    %321 = math.tanh %320 : vector<2x32xf32>
    %322 = vector.extract_strided_slice %319 {offsets = [0, 0], sizes = [2, 32], strides = [1, 1]} : vector<2x128xf32> to vector<2x32xf32>
    %323 = vector.extract_strided_slice %319 {offsets = [0, 32], sizes = [2, 32], strides = [1, 1]} : vector<2x128xf32> to vector<2x32xf32>
    %324 = vector.extract_strided_slice %319 {offsets = [0, 96], sizes = [2, 32], strides = [1, 1]} : vector<2x128xf32> to vector<2x32xf32>
    %325 = arith.mulf %323, %281 : vector<2x32xf32>
    %326 = arith.mulf %322, %321 : vector<2x32xf32>
    %327 = arith.addf %325, %326 : vector<2x32xf32>
    %328 = math.tanh %327 : vector<2x32xf32>
    %329 = arith.mulf %324, %328 : vector<2x32xf32>
    %330 = vector.extract_strided_slice %0 {offsets = [0, 7], sizes = [2, 1], strides = [1, 1]} : vector<2x8xf32> to vector<2x1xf32>
    %331 = vector.broadcast %330 : vector<2x1xf32> to vector<2x32xf32>
    %332 = vector.broadcast %1 : vector<1x32xf32> to vector<2x32xf32>
    %333 = arith.mulf %331, %332 : vector<2x32xf32>
    %334 = vector.broadcast %2 : vector<1x32xf32> to vector<2x32xf32>
    %335 = arith.addf %333, %334 : vector<2x32xf32>
    %cst_48 = arith.constant 0.000000e+00 : f32
    %336 = vector.broadcast %cst_48 : f32 to vector<2x32xf32>
    %337 = arith.maximumf %335, %336 : vector<2x32xf32>
    %338 = tpu.concatenate %337, %310 in 1 : vector<2x32xf32>, vector<2x32xf32> -> vector<2x64xf32>
    %cst_49 = arith.constant dense<0.000000e+00> : vector<2x128xf32>
    %339 = tpu.matmul %338, %3, %cst_49 {dimension_numbers = #tpu.dot_dimension_numbers<[1], [0], [0], [1], [0, 0, 1, 1], [], []>} : vector<2x64xf32>, vector<64x128xf32>, vector<2x128xf32> -> vector<2x128xf32>
    %340 = vector.broadcast %4 : vector<1x128xf32> to vector<2x128xf32>
    %341 = arith.addf %339, %340 : vector<2x128xf32>
    %342 = arith.negf %341 : vector<2x128xf32>
    %343 = math.exp %342 : vector<2x128xf32>
    %cst_50 = arith.constant 1.000000e+00 : f32
    %344 = vector.broadcast %cst_50 : f32 to vector<2x128xf32>
    %345 = arith.addf %344, %343 : vector<2x128xf32>
    %346 = arith.divf %344, %345 : vector<2x128xf32>
    %347 = vector.extract_strided_slice %341 {offsets = [0, 64], sizes = [2, 32], strides = [1, 1]} : vector<2x128xf32> to vector<2x32xf32>
    %348 = math.tanh %347 : vector<2x32xf32>
    %349 = vector.extract_strided_slice %346 {offsets = [0, 0], sizes = [2, 32], strides = [1, 1]} : vector<2x128xf32> to vector<2x32xf32>
    %350 = vector.extract_strided_slice %346 {offsets = [0, 32], sizes = [2, 32], strides = [1, 1]} : vector<2x128xf32> to vector<2x32xf32>
    %351 = vector.extract_strided_slice %346 {offsets = [0, 96], sizes = [2, 32], strides = [1, 1]} : vector<2x128xf32> to vector<2x32xf32>
    %352 = arith.mulf %350, %308 : vector<2x32xf32>
    %353 = arith.mulf %349, %348 : vector<2x32xf32>
    %354 = arith.addf %352, %353 : vector<2x32xf32>
    %355 = math.tanh %354 : vector<2x32xf32>
    %356 = arith.mulf %351, %355 : vector<2x32xf32>
    %357 = tpu.concatenate %356, %329 in 1 : vector<2x32xf32>, vector<2x32xf32> -> vector<2x64xf32>
    %cst_51 = arith.constant dense<0.000000e+00> : vector<2x128xf32>
    %358 = tpu.matmul %357, %5, %cst_51 {dimension_numbers = #tpu.dot_dimension_numbers<[1], [0], [0], [1], [0, 0, 1, 1], [], []>} : vector<2x64xf32>, vector<64x128xf32>, vector<2x128xf32> -> vector<2x128xf32>
    %359 = vector.broadcast %6 : vector<1x128xf32> to vector<2x128xf32>
    %360 = arith.addf %358, %359 : vector<2x128xf32>
    %361 = arith.negf %360 : vector<2x128xf32>
    %362 = math.exp %361 : vector<2x128xf32>
    %cst_52 = arith.constant 1.000000e+00 : f32
    %363 = vector.broadcast %cst_52 : f32 to vector<2x128xf32>
    %364 = arith.addf %363, %362 : vector<2x128xf32>
    %365 = arith.divf %363, %364 : vector<2x128xf32>
    %366 = vector.extract_strided_slice %360 {offsets = [0, 64], sizes = [2, 32], strides = [1, 1]} : vector<2x128xf32> to vector<2x32xf32>
    %367 = math.tanh %366 : vector<2x32xf32>
    %368 = vector.extract_strided_slice %365 {offsets = [0, 0], sizes = [2, 32], strides = [1, 1]} : vector<2x128xf32> to vector<2x32xf32>
    %369 = vector.extract_strided_slice %365 {offsets = [0, 32], sizes = [2, 32], strides = [1, 1]} : vector<2x128xf32> to vector<2x32xf32>
    %370 = vector.extract_strided_slice %365 {offsets = [0, 96], sizes = [2, 32], strides = [1, 1]} : vector<2x128xf32> to vector<2x32xf32>
    %371 = arith.mulf %369, %327 : vector<2x32xf32>
    %372 = arith.mulf %368, %367 : vector<2x32xf32>
    %373 = arith.addf %371, %372 : vector<2x32xf32>
    %374 = math.tanh %373 : vector<2x32xf32>
    %375 = arith.mulf %370, %374 : vector<2x32xf32>
    %376 = tpu.concatenate %356, %375 in 1 : vector<2x32xf32>, vector<2x32xf32> -> vector<2x64xf32>
    %c0_53 = arith.constant 0 : index
    %c0_54 = arith.constant 0 : index
    %377 = vector.load %arg7[%c0_53, %c0_54] : memref<64x1xf32, #tpu.memory_space<vmem>>, vector<64x1xf32>
    %cst_55 = arith.constant dense<0.000000e+00> : vector<2x1xf32>
    %378 = tpu.matmul %376, %377, %cst_55 {dimension_numbers = #tpu.dot_dimension_numbers<[1], [0], [0], [1], [0, 0, 1, 1], [], []>} : vector<2x64xf32>, vector<64x1xf32>, vector<2x1xf32> -> vector<2x1xf32>
    %c0_56 = arith.constant 0 : index
    %c0_57 = arith.constant 0 : index
    %379 = vector.load %arg8[%c0_56, %c0_57] : memref<1x1xf32, #tpu.memory_space<vmem>>, vector<1x1xf32>
    %380 = vector.broadcast %379 : vector<1x1xf32> to vector<2x1xf32>
    %381 = arith.addf %378, %380 : vector<2x1xf32>
    %c0_58 = arith.constant 0 : index
    %c0_59 = arith.constant 0 : index
    %382 = vector.load %arg9[%c0_58, %c0_59] : memref<2x1xf32, #tpu.memory_space<vmem>>, vector<2x1xf32>
    tpu.vector_store %arg9[%c0_58, %c0_59], %381 {strides = array<i32>} : memref<2x1xf32, #tpu.memory_space<vmem>>, vector<2x1xf32>,
    return
  }
}

</mosaic_0001>

<bundles_post_ra>
// kernel: tpu_custom_call.1
= control target key start
LH: loop header
LB: loop body
LE: loop exit
PB: predicated region body
PF: predicated region fallthrough
CT: control target
= control target key end

     0   :  { %s3347_s0 = inlined_call_operand.vmem [shape: f32[2,8], index: 0, kind: input, shape index: {}]   ;;  %s3348_s1 = inlined_call_operand.vmem [shape: f32[1,32], index: 1, kind: input, shape index: {}]   ;;  %s3349_s2 = inlined_call_operand.vmem [shape: f32[1,32], index: 2, kind: input, shape index: {}]   ;;  %s3350_s3 = inlined_call_operand.vmem [shape: f32[64,128], index: 3, kind: input, shape index: {}]   ;;  %s3351_s4 = inlined_call_operand.vmem [shape: f32[1,128], index: 4, kind: input, shape index: {}]   ;;  %s3352_s5 = inlined_call_operand.hbm [shape: f32[64,128], index: 5, kind: input, shape index: {}]   ;;  %s3353_s6 = inlined_call_operand.vmem [shape: f32[1,128], index: 6, kind: input, shape index: {}]   ;;  %s3354_s7 = inlined_call_operand.vmem [shape: f32[64,1], index: 7, kind: input, shape index: {}]   ;;  %s3355_s8 = inlined_call_operand.<no memory space> [shape: f32[1,1], index: 8, kind: input, shape index: {}]   ;;  %s3356_s9 = inlined_call_operand.vmem [shape: f32[2,1], index: 9, kind: output, shape index: {}]  }
   0x1   :  { %v14_v0 = vstv %s3355_s8 }
   0x2   :  { %15 = vst [vmem:[#allocation2] sm:$0x1] %v14_v0 }
   0x3   :  { %16 = vsyncpa [#allocation4], 0  ;;  %s2801_s11 = smov [#allocation3]   ;;  %s2777_s15 = scalar_lea.hbm %s3352_s5, 1024 }
   0x4   :  { %s32_s12 = sshll.u32 %s2801_s11, 4  ;;  %p2778_p0 = scmp.ne.s32.totalorder %s3352_s5, %s2777_s15  ;;  %s33_s12 = int_to_ptr.vmem [resolvable:$true] %s32_s12 }
   0x5   :  { %p2781_p1 = scmp.lt.u32.totalorder %s2777_s15, %s3352_s5 }
   0x7   :  { %p2783_p2 = pnand %p2781_p1, %p2778_p0 }
   0x9   :  { %2786 = shalt.err (!%p2783_p2)
}
   0xa   :  { %s2787_s8 = scalar_lea.vmem %s33_s12, 1024  ;;  %p2792_p4 = scmp.lt.s32.totalorder %s33_s12, %s33_s12 }
   0xb   :  { %p2788_p3 = scmp.ne.s32.totalorder %s33_s12, %s2787_s8  ;;  %p2793_p5 = scmp.lt.s32.totalorder %s2787_s8, %s2787_s8 }
   0xd   :  { %p2794_p6 = por %p2793_p5, %p2792_p4 }
   0xf   :  { %p2795_p7 = pnand %p2794_p6, %p2788_p3 }
  0x11   :  { %2798 = shalt.err (!%p2795_p7)
}
  0x12   :  { %s2802_s20 = smov 128   ;;  %s2803_s21 = smov 8  }
  0x13   :  { %38 = dma.hbm_to_vmem [thread:$0]  %s3352_s5, 1024, %s33_s12, [#allocation4], %s2802_s20, %s2802_s20, %s2803_s21  }
  0x14   :  { %2799 = dma.done.wait [#allocation4], 1024  }
  0x15   :  { %2800 = vsyncadd [#allocation4], 4294966272  ;;  %v2804_v1 = vmov 0   ;;  %v2805_v2 = vmov 0.0|0.0   ;;  %v2887_v3 = vld [vmem:[%s3347_s0] sm:$0x3] }
  0x16   :  { %2635 = vset.pattern.permute.xlu0 %v2804_v1  ;;  %2415 = vmatprep.subr.bf16.mxu0 %v2805_v2  ;;  %v51_v4 = vld [vmem:[%s3350_s3] sm:$0xff]  ;;  %v52_v5 = vld [vmem:[%s3350_s3 + $0x8] sm:$0xff]  ;;  %v53_v7 = vld [vmem:[%s3350_s3 + $0x10] sm:$0xff]  ;;  %vm2806_vm0 = vmmov 0   ;;  %v2807_v12 = vmov 0.0   ;;  %vm89_vm1 = vcmask 261120  }
  0x17   :  { %2427 = vmatprep.subr.bf16.mxu1 %v2805_v2  ;;  %71 = vperm.xlu0 %2635, %v2887_v3   ;;  %v2896_v6 = vpack.c.bf16 %v52_v5, %v51_v4  ;;  %v54_v8 = vld [vmem:[%s3350_s3 + $0x18] sm:$0xff]  ;;  %v55_v10 = vld [vmem:[%s3350_s3 + $0x20] sm:$0xff]  ;;  %v56_v11 = vld [vmem:[%s3350_s3 + $0x28] sm:$0xff]  ;;  %vm97_vm2 = vcmask 523264   ;;  %s2808_s24 = smov 64   ;;  %s2809_s25 = smov 32  }
  0x18   :  { %v2905_v9 = vpack.c.bf16 %v54_v8, %v53_v7  ;;  %2108 = vmatprep.mubr.msk.f32.mxu0 %vm2806_vm0, %v2807_v12  ;;  %2127 = vmatprep.mubr.msk.f32.mxu1 %vm2806_vm0, %v2807_v12  ;;  %v2919_v13 = vpack.c.bf16 %v56_v11, %v55_v10  ;;  %v57_v14 = vld [vmem:[%s3350_s3 + $0x30] sm:$0xff]  ;;  %v58_v15 = vld [vmem:[%s3350_s3 + $0x38] sm:$0xff]  ;;  %v2937_v17 = vld [vmem:[%s3348_s1] ss:$0 sm:$0xff]  ;;  %v2810_v35 = vmov 1   ;;  %vm1894_vm3 = vcmask 1024  }
  0x19   :  { %2417 = vmatpush3.bf16.msra.mxu0 %v2896_v6  ;;  %v2929_v16 = vpack.c.bf16 %v58_v15, %v57_v14  ;;  %v2942_v18 = vld [vmem:[%s3349_s2] ss:$0 sm:$0xff]  ;;  %v60_v39 = vld [vmem:[#allocation3] sm:$0xff]  ;;  %v61_v40 = vld [vmem:[#allocation3 + $0x8] sm:$0xff] }
  0x1a   :  { %2418 = vmatprep.subr.bf16.mxu0 %v2805_v2  ;;  %v2961_v24 = vld [vmem:[%s3351_s4] ss:$0 sm:$0xff]  ;;  %v62_v41 = vld [vmem:[#allocation3 + $0x10] sm:$0xff]  ;;  %v2970_v42 = vpack.c.bf16 %v61_v40, %v60_v39  ;;  %v64_v45 = vld [vmem:[#allocation3 + $0x20] sm:$0xff] }
  0x1b   :  { %2636 = vset.pattern.permute.xlu0 %v2810_v35  ;;  %v63_v43 = vld [vmem:[#allocation3 + $0x18] sm:$0xff]  ;;  %v65_v46 = vld [vmem:[#allocation3 + $0x28] sm:$0xff]  ;;  %v66_v49 = vld [vmem:[#allocation3 + $0x30] sm:$0xff] }
  0x1c   :  { %2429 = vmatpush3.bf16.msra.mxu1 %v2970_v42  ;;  %v2973_v44 = vpack.c.bf16 %v63_v43, %v62_v41  ;;  %v2978_v48 = vpack.c.bf16 %v65_v46, %v64_v45  ;;  %v67_v50 = vld [vmem:[#allocation3 + $0x38] sm:$0xff] }
  0x1d   :  { %2420 = vmatpush3.bf16.msra.mxu0 %v2905_v9  ;;  %2430 = vmatprep.subr.bf16.mxu1 %v2805_v2  ;;  %v2982_v51 = vpack.c.bf16 %v67_v50, %v66_v49  ;;  %v3018_v62 = vld [vmem:[%s3353_s6] ss:$0 sm:$0xff] }
  0x1e   :  { %2421 = vmatprep.subr.bf16.mxu0 %v2805_v2 }
  0x20   :  { %2432 = vmatpush3.bf16.msra.mxu1 %v2973_v44 }
  0x21   :  { %2423 = vmatpush3.bf16.msra.mxu0 %v2919_v13  ;;  %2433 = vmatprep.subr.bf16.mxu1 %v2805_v2 }
  0x22   :  { %2424 = vmatprep.subr.bf16.mxu0 %v2805_v2 }
  0x24   :  { %2435 = vmatpush3.bf16.msra.mxu1 %v2978_v48 }
  0x25   :  { %2426 = vmatpush3.bf16.msra.mxu0 %v2929_v16  ;;  %2436 = vmatprep.subr.bf16.mxu1 %v2805_v2 }
  0x26   :  { %2439 = vmatprep.subr.bf16.mxu0 %v2805_v2 }
  0x28   :  { %2438 = vmatpush3.bf16.msra.mxu1 %v2982_v51 }
  0x29   :  { %2451 = vmatprep.subr.bf16.mxu1 %v2805_v2 }
  0x96   :  { %v72_v19 = vpop.permute.xlu0 %71 }
  0x97   :  { %v80_v20 = vmul.f32 %v2937_v17, %v72_v19 }
  0x99   :  { %v87_v21 = vadd.f32 %v2942_v18, %v80_v20 }
  0x9b   :  { %v88_v22 = vmax.f32 %v87_v21, 0.0 }
  0x9d   :  { %v90_v23 = vsel %vm89_vm1, %v88_v22, 0.0 }
  0x9e   :  { %2109 = vmatmul.mubr.msk.f32.vlgmr.msra.gmra.mrb[0].mxu0 %vm97_vm2, %v90_v23 }
  0x9f   :  { %2441 = vmatpush3.bf16.msra.mxu0 %v2896_v6  ;;  %2146 = vmatprep.mubr.msk.f32.mxu0 %vm2806_vm0, %v2807_v12 }
  0xa0   :  { %2442 = vmatprep.subr.bf16.mxu0 %v2805_v2 }
  0xa3   :  { %2444 = vmatpush3.bf16.msra.mxu0 %v2905_v9 }
  0xa4   :  { %2445 = vmatprep.subr.bf16.mxu0 %v2805_v2 }
  0xa7   :  { %2447 = vmatpush3.bf16.msra.mxu0 %v2919_v13 }
  0xa8   :  { %2448 = vmatprep.subr.bf16.mxu0 %v2805_v2 }
  0xab   :  { %2450 = vmatpush3.bf16.msra.mxu0 %v2929_v16 }
  0xac   :  { %2463 = vmatprep.subr.bf16.mxu0 %v2805_v2 }
 0x171   :  { %v167_v25 = vpop.f32.mrb[0].mxu0 }
 0x172   :  { %v168_v26 = vadd.f32 %v2961_v24, %v167_v25  ;;  %v2110_v27 = vpop.f32.mrb[1].mxu0 }
 0x174   :  { %2644 = vtanh.f32 %v168_v26  ;;  %v1905_v29 = vmul.f32 -1.442695, %v168_v26 }
 0x176   :  { %2646 = vpow2.f32 %v1905_v29  ;;  %v2811_v29 = vmov 2  }
 0x17e   :  { %v2645_v28 = vpop.eup %2644 }
 0x17f   :  { %180 = vrot.lane.b32.xlu0 %v2645_v28, %s2808_s24 }
 0x180   :  { %v2647_v30 = vpop.eup %2646 }
 0x181   :  { %v174_v31 = vadd.f32 1.0, %v2647_v30 }
 0x183   :  { %2648 = vrcp.f32 %v174_v31  ;;  %304 = vperm.xlu0 %2636, %v2887_v3  }
 0x187   :  { %2637 = vset.pattern.permute.xlu0 %v2811_v29 }
 0x18d   :  { %v2649_v32 = vpop.eup %2648 }
 0x18e   :  { %v178_v36 = vmul.f32 0.0, %v2649_v32 }
 0x1f1   :  { %v181_v33 = vpop.permute.xlu0 %180 }
 0x1f2   :  { %v183_v34 = vmul.f32 %v2649_v32, %v181_v33 }
 0x1f4   :  { %185 = vrot.lane.b32.xlu1 %v183_v34, %s2809_s25 }
 0x202   :  { %v305_v54 = vpop.permute.xlu0 %304 }
 0x203   :  { %v307_v55 = vmul.f32 %v2937_v17, %v305_v54 }
 0x205   :  { %v308_v56 = vadd.f32 %v2942_v18, %v307_v55 }
 0x207   :  { %v309_v58 = vmax.f32 %v308_v56, 0.0 }
 0x266   :  { %v186_v37 = vpop.permute.xlu1 %185 }
 0x267   :  { %v2967_v38 = vadd.f32 %v186_v37, %v178_v36 }
 0x269   :  { %2650 = vtanh.f32 %v2967_v38 }
 0x273   :  { %v2651_v47 = vpop.eup %2650 }
 0x274   :  { %191 = vrot.lane.b32.xlu1 %v2651_v47, %s2808_s24 }
 0x2e6   :  { %v192_v52 = vpop.permute.xlu1 %191 }
 0x2e7   :  { %v194_v53 = vmul.f32 %v2649_v32, %v192_v52 }
 0x2e9   :  { %196 = vrot.lane.b32.xlu1 %v194_v53, %s2809_s25 }
 0x2ed   :  { %310 = vrot.lane.b32.xlu1 %v194_v53, %s2808_s24 }
 0x35b   :  { %v197_v57 = vpop.permute.xlu1 %196 }
 0x35c   :  { %v199_v59 = vsel %vm89_vm1, %v197_v57, 0.0 }
 0x35d   :  { %2128 = vmatmul.mubr.msk.f32.vlgmr.msra.gmra.mrb[0].mxu1 %vm97_vm2, %v199_v59 }
 0x35e   :  { %2453 = vmatpush3.bf16.msra.mxu1 %v2970_v42  ;;  %2165 = vmatprep.mubr.msk.f32.mxu1 %vm2806_vm0, %v2807_v12 }
 0x35f   :  { %v311_v60 = vpop.permute.xlu1 %310  ;;  %2454 = vmatprep.subr.bf16.mxu1 %v2805_v2 }
 0x360   :  { %v313_v61 = vsel %vm89_vm1, %v309_v58, %v311_v60 }
 0x361   :  { %2147 = vmatmul.mubr.msk.f32.vlgmr.msra.gmra.mrb[2].mxu0 %vm97_vm2, %v313_v61 }
 0x362   :  { %2465 = vmatpush3.bf16.msra.mxu0 %v2896_v6  ;;  %2456 = vmatpush3.bf16.msra.mxu1 %v2973_v44 }
 0x363   :  { %2466 = vmatprep.subr.bf16.mxu0 %v2805_v2  ;;  %2457 = vmatprep.subr.bf16.mxu1 %v2805_v2 }
 0x364   :  { %2184 = vmatprep.mubr.msk.f32.mxu0 %vm2806_vm0, %v2807_v12 }
 0x366   :  { %2468 = vmatpush3.bf16.msra.mxu0 %v2905_v9  ;;  %2459 = vmatpush3.bf16.msra.mxu1 %v2978_v48 }
 0x367   :  { %2469 = vmatprep.subr.bf16.mxu0 %v2805_v2  ;;  %2460 = vmatprep.subr.bf16.mxu1 %v2805_v2 }
 0x36a   :  { %2471 = vmatpush3.bf16.msra.mxu0 %v2919_v13  ;;  %2462 = vmatpush3.bf16.msra.mxu1 %v2982_v51 }
 0x36b   :  { %2472 = vmatprep.subr.bf16.mxu0 %v2805_v2  ;;  %2475 = vmatprep.subr.bf16.mxu1 %v2805_v2 }
 0x36e   :  { %2474 = vmatpush3.bf16.msra.mxu0 %v2929_v16 }
 0x36f   :  { %2487 = vmatprep.subr.bf16.mxu0 %v2805_v2 }
 0x430   :  { %v275_v63 = vpop.f32.mrb[0].mxu1 }
 0x431   :  { %v276_v0 = vadd.f32 %v3018_v62, %v275_v63  ;;  %v2129_v1 = vpop.f32.mrb[1].mxu1 }
 0x433   :  { %2652 = vtanh.f32 %v276_v0  ;;  %v1908_v11 = vmul.f32 -1.442695, %v276_v0 }
 0x434   :  { %v383_v4 = vpop.f32.mrb[2].mxu0 }
 0x435   :  { %v384_v5 = vadd.f32 %v2961_v24, %v383_v4  ;;  %v2148_v7 = vpop.f32.mrb[3].mxu0 }
 0x437   :  { %2654 = vtanh.f32 %v384_v5  ;;  %v1910_v14 = vmul.f32 -1.442695, %v384_v5 }
 0x438   :  { %2656 = vpow2.f32 %v1908_v11 }
 0x439   :  { %2658 = vpow2.f32 %v1910_v14 }
 0x43d   :  { %v2653_v8 = vpop.eup %2652 }
 0x43e   :  { %288 = vrot.lane.b32.xlu0 %v2653_v8, %s2808_s24 }
 0x441   :  { %v2655_v10 = vpop.eup %2654 }
 0x442   :  { %396 = vrot.lane.b32.xlu1 %v2655_v10, %s2808_s24  ;;  %v2657_v15 = vpop.eup %2656 }
 0x443   :  { %v282_v19 = vadd.f32 1.0, %v2657_v15  ;;  %v2659_v20 = vpop.eup %2658 }
 0x444   :  { %v390_v21 = vadd.f32 1.0, %v2659_v20 }
 0x445   :  { %2660 = vrcp.f32 %v282_v19 }
 0x446   :  { %2662 = vrcp.f32 %v390_v21  ;;  %v2812_v21 = vmov 3  }
 0x447   :  { %2638 = vset.pattern.permute.xlu1 %v2812_v21 }
 0x44f   :  { %v2661_v22 = vpop.eup %2660 }
 0x450   :  { %v2663_v26 = vpop.eup %2662  ;;  %v286_v30 = vmul.f32 0.0, %v2661_v22 }
 0x451   :  { %v394_v33 = vmul.f32 %v2663_v26, %v2967_v38 }
 0x4b0   :  { %v289_v23 = vpop.permute.xlu0 %288 }
 0x4b1   :  { %v291_v25 = vmul.f32 %v2661_v22, %v289_v23 }
 0x4b3   :  { %293 = vrot.lane.b32.xlu0 %v291_v25, %s2809_s25 }
 0x4b4   :  { %v397_v27 = vpop.permute.xlu1 %396 }
 0x4b5   :  { %v399_v28 = vmul.f32 %v2663_v26, %v397_v27 }
 0x4b7   :  { %401 = vrot.lane.b32.xlu1 %v399_v28, %s2809_s25 }
 0x525   :  { %v294_v31 = vpop.permute.xlu0 %293 }
 0x526   :  { %v3026_v32 = vadd.f32 %v294_v31, %v286_v30 }
 0x528   :  { %2664 = vtanh.f32 %v3026_v32 }
 0x529   :  { %v402_v34 = vpop.permute.xlu1 %401 }
 0x52a   :  { %v3030_v35 = vadd.f32 %v402_v34, %v394_v33 }
 0x52c   :  { %2666 = vtanh.f32 %v3030_v35 }
 0x532   :  { %v2665_v36 = vpop.eup %2664 }
 0x533   :  { %299 = vrot.lane.b32.xlu0 %v2665_v36, %s2808_s24 }
 0x536   :  { %v2667_v37 = vpop.eup %2666 }
 0x537   :  { %407 = vrot.lane.b32.xlu1 %v2667_v37, %s2808_s24  ;;  %518 = vperm.xlu0 %2637, %v2887_v3  }
 0x5a5   :  { %v300_v41 = vpop.permute.xlu0 %299 }
 0x5a6   :  { %v302_v38 = vmul.f32 %v2661_v22, %v300_v41 }
 0x5a9   :  { %v408_v39 = vpop.permute.xlu1 %407 }
 0x5aa   :  { %v410_v40 = vmul.f32 %v2663_v26, %v408_v39 }
 0x5ac   :  { %524 = vrot.lane.b32.xlu0 %v410_v40, %s2808_s24  ;;  %412 = vrot.lane.b32.xlu1 %v410_v40, %s2809_s25 }
 0x5b0   :  { %416 = vrot.lane.b32.xlu1 %v302_v38, %s2808_s24 }
 0x5b6   :  { %v519_v43 = vpop.permute.xlu0 %518 }
 0x5b7   :  { %v521_v45 = vmul.f32 %v2937_v17, %v519_v43 }
 0x5b9   :  { %v522_v46 = vadd.f32 %v2942_v18, %v521_v45 }
 0x5bb   :  { %v523_v47 = vmax.f32 %v522_v46, 0.0 }
 0x61e   :  { %v525_v49 = vpop.permute.xlu0 %524  ;;  %v413_v50 = vpop.permute.xlu1 %412 }
 0x61f   :  { %v527_v52 = vsel %vm89_vm1, %v523_v47, %v525_v49 }
 0x620   :  { %2185 = vmatmul.mubr.msk.f32.vlgmr.msra.gmra.mrb[4].mxu0 %vm97_vm2, %v527_v52 }
 0x621   :  { %2489 = vmatpush3.bf16.msra.mxu0 %v2896_v6  ;;  %2222 = vmatprep.mubr.msk.f32.mxu0 %vm2806_vm0, %v2807_v12 }
 0x622   :  { %v417_v53 = vpop.permute.xlu1 %416  ;;  %2490 = vmatprep.subr.bf16.mxu0 %v2805_v2 }
 0x623   :  { %v419_v54 = vsel %vm89_vm1, %v413_v50, %v417_v53 }
 0x624   :  { %2166 = vmatmul.mubr.msk.f32.vlgmr.msra.gmra.mrb[2].mxu1 %vm97_vm2, %v419_v54 }
 0x625   :  { %2477 = vmatpush3.bf16.msra.mxu1 %v2970_v42  ;;  %2492 = vmatpush3.bf16.msra.mxu0 %v2905_v9 }
 0x626   :  { %2478 = vmatprep.subr.bf16.mxu1 %v2805_v2  ;;  %2493 = vmatprep.subr.bf16.mxu0 %v2805_v2 }
 0x627   :  { %2203 = vmatprep.mubr.msk.f32.mxu1 %vm2806_vm0, %v2807_v12 }
 0x629   :  { %2480 = vmatpush3.bf16.msra.mxu1 %v2973_v44  ;;  %2495 = vmatpush3.bf16.msra.mxu0 %v2919_v13 }
 0x62a   :  { %2481 = vmatprep.subr.bf16.mxu1 %v2805_v2  ;;  %2496 = vmatprep.subr.bf16.mxu0 %v2805_v2 }
 0x62d   :  { %2483 = vmatpush3.bf16.msra.mxu1 %v2978_v48  ;;  %2498 = vmatpush3.bf16.msra.mxu0 %v2929_v16 }
 0x62e   :  { %2484 = vmatprep.subr.bf16.mxu1 %v2805_v2  ;;  %2511 = vmatprep.subr.bf16.mxu0 %v2805_v2 }
 0x631   :  { %2486 = vmatpush3.bf16.msra.mxu1 %v2982_v51 }
 0x632   :  { %2499 = vmatprep.subr.bf16.mxu1 %v2805_v2 }
 0x6f3   :  { %v597_v55 = vpop.f32.mrb[4].mxu0 }
 0x6f4   :  { %v598_v56 = vadd.f32 %v2961_v24, %v597_v55  ;;  %v2186_v57 = vpop.f32.mrb[5].mxu0 }
 0x6f6   :  { %2668 = vtanh.f32 %v598_v56  ;;  %v1914_v0 = vmul.f32 -1.442695, %v598_v56 }
 0x6f7   :  { %v489_v58 = vpop.f32.mrb[2].mxu1 }
 0x6f8   :  { %v490_v59 = vadd.f32 %v3018_v62, %v489_v58  ;;  %v2167_v60 = vpop.f32.mrb[3].mxu1 }
 0x6fa   :  { %2670 = vtanh.f32 %v490_v59  ;;  %v1912_v1 = vmul.f32 -1.442695, %v490_v59 }
 0x6fb   :  { %2672 = vpow2.f32 %v1914_v0 }
 0x6fc   :  { %2674 = vpow2.f32 %v1912_v1 }
 0x700   :  { %v2669_v61 = vpop.eup %2668 }
 0x701   :  { %610 = vrot.lane.b32.xlu0 %v2669_v61, %s2808_s24 }
 0x704   :  { %v2671_v63 = vpop.eup %2670 }
 0x705   :  { %502 = vrot.lane.b32.xlu1 %v2671_v63, %s2808_s24  ;;  %v2673_v4 = vpop.eup %2672 }
 0x706   :  { %v604_v5 = vadd.f32 1.0, %v2673_v4  ;;  %v2675_v7 = vpop.eup %2674 }
 0x707   :  { %v496_v8 = vadd.f32 1.0, %v2675_v7 }
 0x708   :  { %2676 = vrcp.f32 %v604_v5 }
 0x709   :  { %2678 = vrcp.f32 %v496_v8  ;;  %v2813_v8 = vmov 4  }
 0x712   :  { %v2677_v10 = vpop.eup %2676 }
 0x713   :  { %v2679_v15 = vpop.eup %2678  ;;  %v608_v22 = vmul.f32 %v2677_v10, %v3030_v35 }
 0x714   :  { %v500_v26 = vmul.f32 %v2679_v15, %v3026_v32 }
 0x773   :  { %v611_v11 = vpop.permute.xlu0 %610 }
 0x774   :  { %v613_v14 = vmul.f32 %v2677_v10, %v611_v11 }
 0x776   :  { %615 = vrot.lane.b32.xlu0 %v613_v14, %s2809_s25 }
 0x777   :  { %v503_v19 = vpop.permute.xlu1 %502 }
 0x778   :  { %v505_v20 = vmul.f32 %v2679_v15, %v503_v19 }
 0x77a   :  { %507 = vrot.lane.b32.xlu1 %v505_v20, %s2809_s25 }
 0x7e8   :  { %v616_v23 = vpop.permute.xlu0 %615 }
 0x7e9   :  { %v3072_v25 = vadd.f32 %v616_v23, %v608_v22 }
 0x7eb   :  { %2680 = vtanh.f32 %v3072_v25 }
 0x7ec   :  { %v508_v27 = vpop.permute.xlu1 %507 }
 0x7ed   :  { %v3076_v28 = vadd.f32 %v508_v27, %v500_v26 }
 0x7ef   :  { %2682 = vtanh.f32 %v3076_v28 }
 0x7f5   :  { %v2681_v29 = vpop.eup %2680 }
 0x7f6   :  { %621 = vrot.lane.b32.xlu0 %v2681_v29, %s2808_s24 }
 0x7f9   :  { %v2683_v30 = vpop.eup %2682 }
 0x7fa   :  { %513 = vrot.lane.b32.xlu1 %v2683_v30, %s2808_s24 }
 0x7fe   :  { %732 = vperm.xlu1 %2638, %v2887_v3  }
 0x802   :  { %2639 = vset.pattern.permute.xlu1 %v2813_v8 }
 0x868   :  { %v622_v31 = vpop.permute.xlu0 %621 }
 0x869   :  { %v624_v33 = vmul.f32 %v2677_v10, %v622_v31 }
 0x86b   :  { %626 = vrot.lane.b32.xlu0 %v624_v33, %s2809_s25 }
 0x86c   :  { %v514_v34 = vpop.permute.xlu1 %513 }
 0x86d   :  { %v516_v35 = vmul.f32 %v2679_v15, %v514_v34 }
 0x86f   :  { %630 = vrot.lane.b32.xlu1 %v516_v35, %s2808_s24  ;;  %738 = vrot.lane.b32.xlu0 %v624_v33, %s2808_s24 }
 0x87d   :  { %v733_v32 = vpop.permute.xlu1 %732 }
 0x87e   :  { %v735_v36 = vmul.f32 %v2937_v17, %v733_v32 }
 0x880   :  { %v736_v37 = vadd.f32 %v2942_v18, %v735_v36 }
 0x882   :  { %v737_v40 = vmax.f32 %v736_v37, 0.0 }
 0x8dd   :  { %v627_v39 = vpop.permute.xlu0 %626 }
 0x8e1   :  { %v631_v41 = vpop.permute.xlu1 %630  ;;  %v739_v38 = vpop.permute.xlu0 %738 }
 0x8e2   :  { %v633_v43 = vsel %vm89_vm1, %v627_v39, %v631_v41  ;;  %v741_v45 = vsel %vm89_vm1, %v737_v40, %v739_v38 }
 0x8e3   :  { %2204 = vmatmul.mubr.msk.f32.vlgmr.msra.gmra.mrb[4].mxu1 %vm97_vm2, %v633_v43  ;;  %2223 = vmatmul.mubr.msk.f32.vlgmr.msra.gmra.mrb[6].mxu0 %vm97_vm2, %v741_v45 }
 0x8e4   :  { %2501 = vmatpush3.bf16.msra.mxu1 %v2970_v42  ;;  %2513 = vmatpush3.bf16.msra.mxu0 %v2896_v6 }
 0x8e5   :  { %2502 = vmatprep.subr.bf16.mxu1 %v2805_v2  ;;  %2514 = vmatprep.subr.bf16.mxu0 %v2805_v2 }
 0x8e6   :  { %2241 = vmatprep.mubr.msk.f32.mxu1 %vm2806_vm0, %v2807_v12  ;;  %2260 = vmatprep.mubr.msk.f32.mxu0 %vm2806_vm0, %v2807_v12 }
 0x8e8   :  { %2504 = vmatpush3.bf16.msra.mxu1 %v2973_v44  ;;  %2516 = vmatpush3.bf16.msra.mxu0 %v2905_v9 }
 0x8e9   :  { %2505 = vmatprep.subr.bf16.mxu1 %v2805_v2  ;;  %2517 = vmatprep.subr.bf16.mxu0 %v2805_v2 }
 0x8ec   :  { %2507 = vmatpush3.bf16.msra.mxu1 %v2978_v48  ;;  %2519 = vmatpush3.bf16.msra.mxu0 %v2919_v13 }
 0x8ed   :  { %2508 = vmatprep.subr.bf16.mxu1 %v2805_v2  ;;  %2520 = vmatprep.subr.bf16.mxu0 %v2805_v2 }
 0x8f0   :  { %2510 = vmatpush3.bf16.msra.mxu1 %v2982_v51  ;;  %2522 = vmatpush3.bf16.msra.mxu0 %v2929_v16 }
 0x8f1   :  { %2523 = vmatprep.subr.bf16.mxu1 %v2805_v2  ;;  %2535 = vmatprep.subr.bf16.mxu0 %v2805_v2 }
 0x9b6   :  { %v703_v46 = vpop.f32.mrb[4].mxu1  ;;  %v811_v47 = vpop.f32.mrb[6].mxu0 }
 0x9b7   :  { %v704_v49 = vadd.f32 %v3018_v62, %v703_v46  ;;  %v812_v50 = vadd.f32 %v2961_v24, %v811_v47  ;;  %v2205_v52 = vpop.f32.mrb[5].mxu1  ;;  %v2224_v53 = vpop.f32.mrb[7].mxu0 }
 0x9b9   :  { %2684 = vtanh.f32 %v704_v49  ;;  %v1916_v56 = vmul.f32 -1.442695, %v704_v49  ;;  %v1918_v57 = vmul.f32 -1.442695, %v812_v50 }
 0x9ba   :  { %2686 = vtanh.f32 %v812_v50 }
 0x9bb   :  { %2688 = vpow2.f32 %v1916_v56 }
 0x9bc   :  { %2690 = vpow2.f32 %v1918_v57 }
 0x9c3   :  { %v2685_v54 = vpop.eup %2684 }
 0x9c4   :  { %v2687_v55 = vpop.eup %2686  ;;  %716 = vrot.lane.b32.xlu1 %v2685_v54, %s2808_s24 }
 0x9c5   :  { %824 = vrot.lane.b32.xlu0 %v2687_v55, %s2808_s24  ;;  %v2689_v58 = vpop.eup %2688 }
 0x9c6   :  { %v2691_v59 = vpop.eup %2690  ;;  %v710_v60 = vadd.f32 1.0, %v2689_v58 }
 0x9c7   :  { %v818_v61 = vadd.f32 1.0, %v2691_v59 }
 0x9c8   :  { %2692 = vrcp.f32 %v710_v60 }
 0x9c9   :  { %2694 = vrcp.f32 %v818_v61  ;;  %v2814_v61 = vmov 5  }
 0x9d2   :  { %v2693_v63 = vpop.eup %2692 }
 0x9d3   :  { %v2695_v1 = vpop.eup %2694  ;;  %v714_v10 = vmul.f32 %v2693_v63, %v3076_v28 }
 0x9d4   :  { %v822_v14 = vmul.f32 %v2695_v1, %v3072_v25 }
 0xa36   :  { %v717_v0 = vpop.permute.xlu1 %716 }
 0xa37   :  { %v719_v4 = vmul.f32 %v2693_v63, %v717_v0  ;;  %v825_v5 = vpop.permute.xlu0 %824 }
 0xa38   :  { %v827_v7 = vmul.f32 %v2695_v1, %v825_v5 }
 0xa39   :  { %721 = vrot.lane.b32.xlu1 %v719_v4, %s2809_s25 }
 0xa3a   :  { %829 = vrot.lane.b32.xlu0 %v827_v7, %s2809_s25 }
 0xaab   :  { %v722_v11 = vpop.permute.xlu1 %721 }
 0xaac   :  { %v3119_v15 = vadd.f32 %v722_v11, %v714_v10  ;;  %v830_v19 = vpop.permute.xlu0 %829 }
 0xaad   :  { %v3121_v20 = vadd.f32 %v830_v19, %v822_v14 }
 0xaae   :  { %2696 = vtanh.f32 %v3119_v15 }
 0xaaf   :  { %2698 = vtanh.f32 %v3121_v20 }
 0xab8   :  { %v2697_v21 = vpop.eup %2696 }
 0xab9   :  { %v2699_v22 = vpop.eup %2698  ;;  %727 = vrot.lane.b32.xlu1 %v2697_v21, %s2808_s24 }
 0xaba   :  { %835 = vrot.lane.b32.xlu0 %v2699_v22, %s2808_s24 }
 0xabd   :  { %946 = vperm.xlu1 %2639, %v2887_v3  }
 0xac1   :  { %2640 = vset.pattern.permute.xlu1 %v2814_v61 }
 0xb2b   :  { %v728_v23 = vpop.permute.xlu1 %727 }
 0xb2c   :  { %v730_v26 = vmul.f32 %v2693_v63, %v728_v23  ;;  %v836_v25 = vpop.permute.xlu0 %835 }
 0xb2d   :  { %v838_v27 = vmul.f32 %v2695_v1, %v836_v25 }
 0xb2e   :  { %844 = vrot.lane.b32.xlu1 %v730_v26, %s2808_s24 }
 0xb2f   :  { %840 = vrot.lane.b32.xlu0 %v838_v27, %s2809_s25 }
 0xb33   :  { %952 = vrot.lane.b32.xlu0 %v838_v27, %s2808_s24 }
 0xb3c   :  { %v947_v28 = vpop.permute.xlu1 %946 }
 0xb3d   :  { %v949_v29 = vmul.f32 %v2937_v17, %v947_v28 }
 0xb3f   :  { %v950_v30 = vadd.f32 %v2942_v18, %v949_v29 }
 0xb41   :  { %v951_v34 = vmax.f32 %v950_v30, 0.0 }
 0xba0   :  { %v845_v31 = vpop.permute.xlu1 %844 }
 0xba1   :  { %v841_v33 = vpop.permute.xlu0 %840 }
 0xba2   :  { %v847_v35 = vsel %vm89_vm1, %v841_v33, %v845_v31 }
 0xba3   :  { %2242 = vmatmul.mubr.msk.f32.vlgmr.msra.gmra.mrb[6].mxu1 %vm97_vm2, %v847_v35 }
 0xba4   :  { %2525 = vmatpush3.bf16.msra.mxu1 %v2970_v42  ;;  %2279 = vmatprep.mubr.msk.f32.mxu1 %vm2806_vm0, %v2807_v12 }
 0xba5   :  { %v953_v32 = vpop.permute.xlu0 %952  ;;  %2526 = vmatprep.subr.bf16.mxu1 %v2805_v2 }
 0xba6   :  { %v955_v36 = vsel %vm89_vm1, %v951_v34, %v953_v32 }
 0xba7   :  { %2261 = vmatmul.mubr.msk.f32.vlgmr.msra.gmra.mrb[8].mxu0 %vm97_vm2, %v955_v36 }
 0xba8   :  { %2528 = vmatpush3.bf16.msra.mxu1 %v2973_v44  ;;  %2537 = vmatpush3.bf16.msra.mxu0 %v2896_v6 }
 0xba9   :  { %2529 = vmatprep.subr.bf16.mxu1 %v2805_v2  ;;  %2538 = vmatprep.subr.bf16.mxu0 %v2805_v2 }
 0xbaa   :  { %2298 = vmatprep.mubr.msk.f32.mxu0 %vm2806_vm0, %v2807_v12 }
 0xbac   :  { %2531 = vmatpush3.bf16.msra.mxu1 %v2978_v48  ;;  %2540 = vmatpush3.bf16.msra.mxu0 %v2905_v9 }
 0xbad   :  { %2532 = vmatprep.subr.bf16.mxu1 %v2805_v2  ;;  %2541 = vmatprep.subr.bf16.mxu0 %v2805_v2 }
 0xbb0   :  { %2534 = vmatpush3.bf16.msra.mxu1 %v2982_v51  ;;  %2543 = vmatpush3.bf16.msra.mxu0 %v2919_v13 }
 0xbb1   :  { %2544 = vmatprep.subr.bf16.mxu0 %v2805_v2  ;;  %2547 = vmatprep.subr.bf16.mxu1 %v2805_v2 }
 0xbb4   :  { %2546 = vmatpush3.bf16.msra.mxu0 %v2929_v16 }
 0xbb5   :  { %2559 = vmatprep.subr.bf16.mxu0 %v2805_v2 }
 0xc76   :  { %v917_v37 = vpop.f32.mrb[6].mxu1 }
 0xc77   :  { %v918_v39 = vadd.f32 %v3018_v62, %v917_v37  ;;  %v2243_v40 = vpop.f32.mrb[7].mxu1 }
 0xc79   :  { %2700 = vtanh.f32 %v918_v39  ;;  %v1920_v47 = vmul.f32 -1.442695, %v918_v39 }
 0xc7a   :  { %v1025_v41 = vpop.f32.mrb[8].mxu0 }
 0xc7b   :  { %v1026_v38 = vadd.f32 %v2961_v24, %v1025_v41  ;;  %v2262_v43 = vpop.f32.mrb[9].mxu0 }
 0xc7d   :  { %2702 = vtanh.f32 %v1026_v38  ;;  %v1922_v49 = vmul.f32 -1.442695, %v1026_v38 }
 0xc7e   :  { %2704 = vpow2.f32 %v1920_v47 }
 0xc7f   :  { %2706 = vpow2.f32 %v1922_v49 }
 0xc83   :  { %v2701_v45 = vpop.eup %2700 }
 0xc84   :  { %930 = vrot.lane.b32.xlu1 %v2701_v45, %s2808_s24 }
 0xc87   :  { %v2703_v46 = vpop.eup %2702 }
 0xc88   :  { %1038 = vrot.lane.b32.xlu0 %v2703_v46, %s2808_s24  ;;  %v2705_v50 = vpop.eup %2704 }
 0xc89   :  { %v924_v52 = vadd.f32 1.0, %v2705_v50  ;;  %v2707_v53 = vpop.eup %2706 }
 0xc8a   :  { %v1032_v54 = vadd.f32 1.0, %v2707_v53 }
 0xc8b   :  { %2708 = vrcp.f32 %v924_v52 }
 0xc8c   :  { %2710 = vrcp.f32 %v1032_v54  ;;  %v2815_v54 = vmov 6  }
 0xc95   :  { %v2709_v55 = vpop.eup %2708 }
 0xc96   :  { %v2711_v58 = vpop.eup %2710  ;;  %v928_v63 = vmul.f32 %v2709_v55, %v3119_v15 }
 0xc97   :  { %v1036_v4 = vmul.f32 %v2711_v58, %v3121_v20 }
 0xcf6   :  { %v931_v56 = vpop.permute.xlu1 %930 }
 0xcf7   :  { %v933_v57 = vmul.f32 %v2709_v55, %v931_v56 }
 0xcf9   :  { %935 = vrot.lane.b32.xlu1 %v933_v57, %s2809_s25 }
 0xcfa   :  { %v1039_v59 = vpop.permute.xlu0 %1038 }
 0xcfb   :  { %v1041_v60 = vmul.f32 %v2711_v58, %v1039_v59 }
 0xcfd   :  { %1043 = vrot.lane.b32.xlu0 %v1041_v60, %s2809_s25 }
 0xd6b   :  { %v936_v0 = vpop.permute.xlu1 %935 }
 0xd6c   :  { %v3164_v1 = vadd.f32 %v936_v0, %v928_v63 }
 0xd6e   :  { %2712 = vtanh.f32 %v3164_v1 }
 0xd6f   :  { %v1044_v5 = vpop.permute.xlu0 %1043 }
 0xd70   :  { %v3168_v7 = vadd.f32 %v1044_v5, %v1036_v4 }
 0xd72   :  { %2714 = vtanh.f32 %v3168_v7 }
 0xd78   :  { %v2713_v8 = vpop.eup %2712 }
 0xd79   :  { %941 = vrot.lane.b32.xlu1 %v2713_v8, %s2808_s24 }
 0xd7c   :  { %v2715_v10 = vpop.eup %2714 }
 0xd7d   :  { %1049 = vrot.lane.b32.xlu0 %v2715_v10, %s2808_s24  ;;  %1160 = vperm.xlu1 %2640, %v2887_v3  }
 0xd81   :  { %2641 = vset.pattern.permute.xlu1 %v2815_v54  ;;  %v2773_v54 = vld [vmem:[%s3348_s1] ss:$0 sm:$0xff] }
 0xdeb   :  { %v942_v11 = vpop.permute.xlu1 %941 }
 0xdec   :  { %v944_v14 = vmul.f32 %v2709_v55, %v942_v11 }
 0xdee   :  { %1058 = vrot.lane.b32.xlu1 %v944_v14, %s2808_s24 }
 0xdef   :  { %v1050_v15 = vpop.permute.xlu0 %1049 }
 0xdf0   :  { %v1052_v19 = vmul.f32 %v2711_v58, %v1050_v15 }
 0xdf2   :  { %1054 = vrot.lane.b32.xlu0 %v1052_v19, %s2809_s25 }
 0xdf6   :  { %1166 = vrot.lane.b32.xlu0 %v1052_v19, %s2808_s24 }
 0xdfc   :  { %v1161_v20 = vpop.permute.xlu1 %1160 }
 0xdfd   :  { %v1163_v21 = vmul.f32 %v2937_v17, %v1161_v20 }
 0xdff   :  { %v1164_v22 = vadd.f32 %v2942_v18, %v1163_v21 }
 0xe01   :  { %v1165_v25 = vmax.f32 %v1164_v22, 0.0 }
 0xe60   :  { %v1059_v23 = vpop.permute.xlu1 %1058 }
 0xe64   :  { %v1055_v26 = vpop.permute.xlu0 %1054 }
 0xe65   :  { %v1061_v27 = vsel %vm89_vm1, %v1055_v26, %v1059_v23 }
 0xe66   :  { %2280 = vmatmul.mubr.msk.f32.vlgmr.msra.gmra.mrb[8].mxu1 %vm97_vm2, %v1061_v27 }
 0xe67   :  { %2549 = vmatpush3.bf16.msra.mxu1 %v2970_v42  ;;  %2317 = vmatprep.mubr.msk.f32.mxu1 %vm2806_vm0, %v2807_v12 }
 0xe68   :  { %v1167_v28 = vpop.permute.xlu0 %1166  ;;  %2550 = vmatprep.subr.bf16.mxu1 %v2805_v2 }
 0xe69   :  { %v1169_v29 = vsel %vm89_vm1, %v1165_v25, %v1167_v28 }
 0xe6a   :  { %2299 = vmatmul.mubr.msk.f32.vlgmr.msra.gmra.mrb[10].mxu0 %vm97_vm2, %v1169_v29 }
 0xe6b   :  { %2552 = vmatpush3.bf16.msra.mxu1 %v2973_v44  ;;  %2561 = vmatpush3.bf16.msra.mxu0 %v2896_v6 }
 0xe6c   :  { %2553 = vmatprep.subr.bf16.mxu1 %v2805_v2  ;;  %2562 = vmatprep.subr.bf16.mxu0 %v2805_v2 }
 0xe6d   :  { %2336 = vmatprep.mubr.msk.f32.mxu0 %vm2806_vm0, %v2807_v12 }
 0xe6f   :  { %2555 = vmatpush3.bf16.msra.mxu1 %v2978_v48  ;;  %2564 = vmatpush3.bf16.msra.mxu0 %v2905_v9 }
 0xe70   :  { %2556 = vmatprep.subr.bf16.mxu1 %v2805_v2  ;;  %2565 = vmatprep.subr.bf16.mxu0 %v2805_v2 }
 0xe73   :  { %2558 = vmatpush3.bf16.msra.mxu1 %v2982_v51  ;;  %2567 = vmatpush3.bf16.msra.mxu0 %v2919_v13 }
 0xe74   :  { %2568 = vmatprep.subr.bf16.mxu0 %v2805_v2  ;;  %2571 = vmatprep.subr.bf16.mxu1 %v2805_v2 }
 0xe77   :  { %2570 = vmatpush3.bf16.msra.mxu0 %v2929_v16 }
 0xe78   :  { %2583 = vmatprep.subr.bf16.mxu0 %v2805_v2 }
 0xf39   :  { %v1131_v30 = vpop.f32.mrb[8].mxu1 }
 0xf3a   :  { %v1132_v31 = vadd.f32 %v3018_v62, %v1131_v30  ;;  %v2281_v33 = vpop.f32.mrb[9].mxu1 }
 0xf3c   :  { %2716 = vtanh.f32 %v1132_v31  ;;  %v1924_v39 = vmul.f32 -1.442695, %v1132_v31 }
 0xf3d   :  { %v1239_v34 = vpop.f32.mrb[10].mxu0 }
 0xf3e   :  { %v1240_v35 = vadd.f32 %v2961_v24, %v1239_v34  ;;  %v2300_v32 = vpop.f32.mrb[11].mxu0 }
 0xf3f   :  { %v2816_v32 = vmov 7  }
 0xf40   :  { %2718 = vtanh.f32 %v1240_v35  ;;  %v1926_v40 = vmul.f32 -1.442695, %v1240_v35  ;;  %2643 = vset.pattern.permute.xlu0 %v2816_v32 }
 0xf41   :  { %2720 = vpow2.f32 %v1924_v39 }
 0xf42   :  { %2722 = vpow2.f32 %v1926_v40 }
 0xf46   :  { %v2717_v36 = vpop.eup %2716 }
 0xf47   :  { %1144 = vrot.lane.b32.xlu1 %v2717_v36, %s2808_s24 }
 0xf4a   :  { %v2719_v37 = vpop.eup %2718 }
 0xf4b   :  { %1252 = vrot.lane.b32.xlu0 %v2719_v37, %s2808_s24  ;;  %v2721_v41 = vpop.eup %2720 }
 0xf4c   :  { %v1138_v38 = vadd.f32 1.0, %v2721_v41  ;;  %v2723_v43 = vpop.eup %2722 }
 0xf4d   :  { %v1246_v45 = vadd.f32 1.0, %v2723_v43 }
 0xf4e   :  { %2724 = vrcp.f32 %v1138_v38 }
 0xf4f   :  { %2726 = vrcp.f32 %v1246_v45 }
 0xf58   :  { %v2725_v46 = vpop.eup %2724 }
 0xf59   :  { %v2727_v50 = vpop.eup %2726  ;;  %v1142_v55 = vmul.f32 %v2725_v46, %v3164_v1 }
 0xf5a   :  { %v1250_v58 = vmul.f32 %v2727_v50, %v3168_v7 }
 0xfb9   :  { %v1145_v47 = vpop.permute.xlu1 %1144 }
 0xfba   :  { %v1147_v49 = vmul.f32 %v2725_v46, %v1145_v47 }
 0xfbc   :  { %1149 = vrot.lane.b32.xlu1 %v1147_v49, %s2809_s25 }
 0xfbd   :  { %v1253_v52 = vpop.permute.xlu0 %1252 }
 0xfbe   :  { %v1255_v53 = vmul.f32 %v2727_v50, %v1253_v52 }
 0xfc0   :  { %1257 = vrot.lane.b32.xlu0 %v1255_v53, %s2809_s25 }
0x102e   :  { %v1150_v56 = vpop.permute.xlu1 %1149 }
0x102f   :  { %v3210_v57 = vadd.f32 %v1150_v56, %v1142_v55  ;;  %v2774_v56 = vld [vmem:[%s3349_s2] ss:$0 sm:$0xff] }
0x1031   :  { %2728 = vtanh.f32 %v3210_v57 }
0x1032   :  { %v1258_v59 = vpop.permute.xlu0 %1257 }
0x1033   :  { %v3214_v60 = vadd.f32 %v1258_v59, %v1250_v58 }
0x1035   :  { %2730 = vtanh.f32 %v3214_v60 }
0x103b   :  { %v2729_v61 = vpop.eup %2728 }
0x103c   :  { %1155 = vrot.lane.b32.xlu1 %v2729_v61, %s2808_s24 }
0x103f   :  { %v2731_v63 = vpop.eup %2730 }
0x1040   :  { %1263 = vrot.lane.b32.xlu0 %v2731_v63, %s2808_s24  ;;  %1374 = vperm.xlu1 %2641, %v2887_v3  }
0x1044   :  { %2642 = vset.pattern.permute.xlu1 %v2816_v32 }
0x10ae   :  { %v1156_v0 = vpop.permute.xlu1 %1155 }
0x10af   :  { %v1158_v1 = vmul.f32 %v2725_v46, %v1156_v0  ;;  %v2772_v46 = vld [vmem:[%s3347_s0] sm:$0x3] }
0x10b1   :  { %1272 = vrot.lane.b32.xlu1 %v1158_v1, %s2808_s24 }
0x10b2   :  { %v1264_v4 = vpop.permute.xlu0 %1263 }
0x10b3   :  { %v1266_v5 = vmul.f32 %v2727_v50, %v1264_v4 }
0x10b5   :  { %1268 = vrot.lane.b32.xlu0 %v1266_v5, %s2809_s25 }
0x10b9   :  { %1380 = vrot.lane.b32.xlu0 %v1266_v5, %s2808_s24 }
0x10bf   :  { %v1375_v7 = vpop.permute.xlu1 %1374 }
0x10c0   :  { %v1377_v8 = vmul.f32 %v2937_v17, %v1375_v7 }
0x10c2   :  { %v1378_v10 = vadd.f32 %v2942_v18, %v1377_v8 }
0x10c4   :  { %v1379_v15 = vmax.f32 %v1378_v10, 0.0 }
0x1123   :  { %v1273_v11 = vpop.permute.xlu1 %1272 }
0x1127   :  { %v1269_v14 = vpop.permute.xlu0 %1268 }
0x1128   :  { %v1275_v3 = vsel %vm89_vm1, %v1269_v14, %v1273_v11 }
0x1129   :  { %2318 = vmatmul.mubr.msk.f32.vlgmr.msra.gmra.mrb[10].mxu1 %vm97_vm2, %v1275_v3 }
0x112a   :  { %2573 = vmatpush3.bf16.msra.mxu1 %v2970_v42  ;;  %2355 = vmatprep.mubr.msk.f32.mxu1 %vm2806_vm0, %v2807_v12 }
0x112b   :  { %v1381_v19 = vpop.permute.xlu0 %1380  ;;  %2574 = vmatprep.subr.bf16.mxu1 %v2805_v2 }
0x112c   :  { %v1383_v20 = vsel %vm89_vm1, %v1379_v15, %v1381_v19 }
0x112d   :  { %2337 = vmatmul.mubr.msk.f32.vlgmr.msra.gmra.mrb[12].mxu0 %vm97_vm2, %v1383_v20 }
0x112e   :  { %2576 = vmatpush3.bf16.msra.mxu1 %v2973_v44  ;;  %2585 = vmatpush3.bf16.msra.mxu0 %v2896_v6 }
0x112f   :  { %2577 = vmatprep.subr.bf16.mxu1 %v2805_v2  ;;  %2586 = vmatprep.subr.bf16.mxu0 %v2805_v2 }
0x1130   :  { %2374 = vmatprep.mubr.msk.f32.mxu0 %vm2806_vm0, %v2807_v12 }
0x1132   :  { %2579 = vmatpush3.bf16.msra.mxu1 %v2978_v48  ;;  %2588 = vmatpush3.bf16.msra.mxu0 %v2905_v9 }
0x1133   :  { %2580 = vmatprep.subr.bf16.mxu1 %v2805_v2  ;;  %2589 = vmatprep.subr.bf16.mxu0 %v2805_v2 }
0x1136   :  { %2582 = vmatpush3.bf16.msra.mxu1 %v2982_v51  ;;  %2591 = vmatpush3.bf16.msra.mxu0 %v2919_v13 }
0x1137   :  { %2592 = vmatprep.subr.bf16.mxu0 %v2805_v2  ;;  %2595 = vmatprep.subr.bf16.mxu1 %v2805_v2 }
0x113a   :  { %2594 = vmatpush3.bf16.msra.mxu0 %v2929_v16 }
0x113b   :  { %2607 = vmatprep.subr.bf16.mxu0 %v2805_v2 }
0x11fc   :  { %v1345_v6 = vpop.f32.mrb[10].mxu1 }
0x11fd   :  { %v1346_v17 = vadd.f32 %v3018_v62, %v1345_v6  ;;  %v2319_v9 = vpop.f32.mrb[11].mxu1 }
0x11ff   :  { %2732 = vtanh.f32 %v1346_v17  ;;  %v1928_v26 = vmul.f32 -1.442695, %v1346_v17 }
0x1200   :  { %v1453_v18 = vpop.f32.mrb[12].mxu0 }
0x1201   :  { %v1454_v21 = vadd.f32 %v2961_v24, %v1453_v18  ;;  %v2338_v22 = vpop.f32.mrb[13].mxu0 }
0x1203   :  { %2734 = vtanh.f32 %v1454_v21  ;;  %v1930_v16 = vmul.f32 -1.442695, %v1454_v21 }
0x1204   :  { %2736 = vpow2.f32 %v1928_v26 }
0x1205   :  { %2738 = vpow2.f32 %v1930_v16 }
0x1209   :  { %v2733_v23 = vpop.eup %2732 }
0x120a   :  { %1358 = vrot.lane.b32.xlu1 %v2733_v23, %s2808_s24 }
0x120d   :  { %v2735_v13 = vpop.eup %2734 }
0x120e   :  { %1466 = vrot.lane.b32.xlu0 %v2735_v13, %s2808_s24  ;;  %v2737_v25 = vpop.eup %2736 }
0x120f   :  { %v1352_v27 = vadd.f32 1.0, %v2737_v25  ;;  %v2739_v28 = vpop.eup %2738 }
0x1210   :  { %v1460_v29 = vadd.f32 1.0, %v2739_v28 }
0x1211   :  { %2740 = vrcp.f32 %v1352_v27 }
0x1212   :  { %2742 = vrcp.f32 %v1460_v29 }
0x121b   :  { %v2741_v30 = vpop.eup %2740 }
0x121c   :  { %v2743_v33 = vpop.eup %2742  ;;  %v1356_v36 = vmul.f32 %v2741_v30, %v3210_v57 }
0x121d   :  { %v1464_v40 = vmul.f32 %v2743_v33, %v3214_v60 }
0x127c   :  { %v1359_v24 = vpop.permute.xlu1 %1358 }
0x127d   :  { %v1361_v31 = vmul.f32 %v2741_v30, %v1359_v24 }
0x127f   :  { %1363 = vrot.lane.b32.xlu1 %v1361_v31, %s2809_s25 }
0x1280   :  { %v1467_v34 = vpop.permute.xlu0 %1466 }
0x1281   :  { %v1469_v35 = vmul.f32 %v2743_v33, %v1467_v34 }
0x1283   :  { %1471 = vrot.lane.b32.xlu0 %v1469_v35, %s2809_s25  ;;  %v2776_v35 = vld [vmem:[%s3353_s6] ss:$0 sm:$0xff] }
0x12f1   :  { %v1364_v37 = vpop.permute.xlu1 %1363 }
0x12f2   :  { %v3256_v39 = vadd.f32 %v1364_v37, %v1356_v36 }
0x12f4   :  { %2744 = vtanh.f32 %v3256_v39 }
0x12f5   :  { %v1472_v41 = vpop.permute.xlu0 %1471 }
0x12f6   :  { %v3260_v38 = vadd.f32 %v1472_v41, %v1464_v40 }
0x12f8   :  { %2746 = vtanh.f32 %v3260_v38 }
0x12fe   :  { %v2745_v43 = vpop.eup %2744 }
0x12ff   :  { %1369 = vrot.lane.b32.xlu1 %v2745_v43, %s2808_s24 }
0x1302   :  { %v2747_v45 = vpop.eup %2746 }
0x1303   :  { %1477 = vrot.lane.b32.xlu0 %v2747_v45, %s2808_s24  ;;  %1588 = vperm.xlu1 %2642, %v2772_v46  }
0x1371   :  { %v1370_v47 = vpop.permute.xlu1 %1369 }
0x1372   :  { %v1372_v49 = vmul.f32 %v2741_v30, %v1370_v47 }
0x1374   :  { %1486 = vrot.lane.b32.xlu1 %v1372_v49, %s2808_s24 }
0x1375   :  { %v1478_v50 = vpop.permute.xlu0 %1477 }
0x1376   :  { %v1480_v52 = vmul.f32 %v2743_v33, %v1478_v50  ;;  %v1806_v50 = vld [vmem:[%s3354_s7] sm:$0xff] }
0x1378   :  { %1482 = vrot.lane.b32.xlu0 %v1480_v52, %s2809_s25 }
0x137c   :  { %1594 = vrot.lane.b32.xlu0 %v1480_v52, %s2808_s24  ;;  %v1807_v52 = vld [vmem:[%s3354_s7 + $0x8] sm:$0xff] }
0x1382   :  { %v1589_v53 = vpop.permute.xlu1 %1588 }
0x1383   :  { %v1591_v55 = vmul.f32 %v2773_v54, %v1589_v53  ;;  %v1808_v53 = vld [vmem:[%s3354_s7 + $0x10] sm:$0xff]  ;;  %v2608_v54 = vpack.c.bf16 %v1807_v52, %v1806_v50 }
0x1385   :  { %v1592_v57 = vadd.f32 %v2774_v56, %v1591_v55  ;;  %v1809_v55 = vld [vmem:[%s3354_s7 + $0x18] sm:$0xff] }
0x1386   :  { %v2611_v56 = vpack.c.bf16 %v1809_v55, %v1808_v53 }
0x1387   :  { %v1593_v60 = vmax.f32 %v1592_v57, 0.0  ;;  %v1810_v57 = vld [vmem:[%s3354_s7 + $0x20] sm:$0xff] }
0x13e6   :  { %v1487_v58 = vpop.permute.xlu1 %1486 }
0x13ea   :  { %v1483_v59 = vpop.permute.xlu0 %1482 }
0x13eb   :  { %v1489_v61 = vsel %vm89_vm1, %v1483_v59, %v1487_v58  ;;  %v1811_v58 = vld [vmem:[%s3354_s7 + $0x28] sm:$0xff] }
0x13ec   :  { %2356 = vmatmul.mubr.msk.f32.vlgmr.msra.gmra.mrb[12].mxu1 %vm97_vm2, %v1489_v61  ;;  %v2614_v59 = vpack.c.bf16 %v1811_v58, %v1810_v57  ;;  %v1813_v61 = vld [vmem:[%s3354_s7 + $0x38] sm:$0xff] }
0x13ed   :  { %2597 = vmatpush3.bf16.msra.mxu1 %v2970_v42  ;;  %2393 = vmatprep.mubr.msk.f32.mxu1 %vm2806_vm0, %v2807_v12 }
0x13ee   :  { %v1595_v63 = vpop.permute.xlu0 %1594  ;;  %2598 = vmatprep.subr.bf16.mxu1 %v2805_v2 }
0x13ef   :  { %v1597_v0 = vsel %vm89_vm1, %v1593_v60, %v1595_v63  ;;  %v1812_v60 = vld [vmem:[%s3354_s7 + $0x30] sm:$0xff] }
0x13f0   :  { %2375 = vmatmul.mubr.msk.f32.vlgmr.msra.gmra.mrb[14].mxu0 %vm97_vm2, %v1597_v0  ;;  %v2617_v0 = vpack.c.bf16 %v1813_v61, %v1812_v60 }
0x13f1   :  { %2600 = vmatpush3.bf16.msra.mxu1 %v2973_v44  ;;  %2412 = vmatprep.mubr.msk.f32.mxu0 %vm2806_vm0, %v2807_v12  ;;  %v2775_v44 = vld [vmem:[%s3351_s4] ss:$0 sm:$0xff] }
0x13f2   :  { %2601 = vmatprep.subr.bf16.mxu1 %v2805_v2  ;;  %2609 = vmatpush3.bf16.msra.mxu0 %v2608_v54 }
0x13f3   :  { %2610 = vmatprep.subr.bf16.mxu0 %v2805_v2 }
0x13f5   :  { %2603 = vmatpush3.bf16.msra.mxu1 %v2978_v48 }
0x13f6   :  { %2604 = vmatprep.subr.bf16.mxu1 %v2805_v2  ;;  %2612 = vmatpush3.bf16.msra.mxu0 %v2611_v56 }
0x13f7   :  { %2613 = vmatprep.subr.bf16.mxu0 %v2805_v2 }
0x13f9   :  { %2606 = vmatpush3.bf16.msra.mxu1 %v2982_v51 }
0x13fa   :  { %2615 = vmatpush3.bf16.msra.mxu0 %v2614_v59 }
0x13fb   :  { %2616 = vmatprep.subr.bf16.mxu0 %v2805_v2 }
0x13fe   :  { %2618 = vmatpush3.bf16.msra.mxu0 %v2617_v0 }
0x14bf   :  { %v1559_v42 = vpop.f32.mrb[12].mxu1 }
0x14c0   :  { %v1560_v1 = vadd.f32 %v3018_v62, %v1559_v42  ;;  %v2357_v4 = vpop.f32.mrb[13].mxu1 }
0x14c2   :  { %2748 = vtanh.f32 %v1560_v1  ;;  %v1932_v51 = vmul.f32 -1.442695, %v1560_v1 }
0x14c3   :  { %v1667_v5 = vpop.f32.mrb[14].mxu0 }
0x14c4   :  { %v1668_v7 = vadd.f32 %v2775_v44, %v1667_v5  ;;  %v2376_v12 = vpop.f32.mrb[15].mxu0  ;;  %v1937_v44 = vld [vmem:[#allocation2] ss:$0 sm:$0xff] }
0x14c6   :  { %2750 = vtanh.f32 %v1668_v7  ;;  %v1934_v10 = vmul.f32 -1.442695, %v1668_v7 }
0x14c7   :  { %2752 = vpow2.f32 %v1932_v51 }
0x14c8   :  { %2754 = vpow2.f32 %v1934_v10 }
0x14cc   :  { %v2749_v8 = vpop.eup %2748 }
0x14cd   :  { %1572 = vrot.lane.b32.xlu1 %v2749_v8, %s2808_s24 }
0x14d0   :  { %v2751_v48 = vpop.eup %2750 }
0x14d1   :  { %1680 = vrot.lane.b32.xlu0 %v2751_v48, %s2808_s24  ;;  %v2753_v62 = vpop.eup %2752 }
0x14d2   :  { %v1566_v11 = vadd.f32 1.0, %v2753_v62  ;;  %v2755_v14 = vpop.eup %2754 }
0x14d3   :  { %v1674_v15 = vadd.f32 1.0, %v2755_v14 }
0x14d4   :  { %2756 = vrcp.f32 %v1566_v11 }
0x14d5   :  { %2758 = vrcp.f32 %v1674_v15 }
0x14de   :  { %v2757_v3 = vpop.eup %2756 }
0x14df   :  { %v2759_v6 = vpop.eup %2758  ;;  %v1570_v18 = vmul.f32 %v2757_v3, %v3256_v39 }
0x14e0   :  { %v1678_v23 = vmul.f32 %v2759_v6, %v3260_v38 }
0x153f   :  { %v1573_v19 = vpop.permute.xlu1 %1572 }
0x1540   :  { %v1575_v20 = vmul.f32 %v2757_v3, %v1573_v19 }
0x1542   :  { %1577 = vrot.lane.b32.xlu1 %v1575_v20, %s2809_s25 }
0x1543   :  { %v1681_v17 = vpop.permute.xlu0 %1680 }
0x1544   :  { %v1683_v9 = vmul.f32 %v2759_v6, %v1681_v17 }
0x1546   :  { %1685 = vrot.lane.b32.xlu0 %v1683_v9, %s2809_s25 }
0x15b4   :  { %v1578_v21 = vpop.permute.xlu1 %1577 }
0x15b5   :  { %v1580_v22 = vadd.f32 %v1578_v21, %v1570_v18 }
0x15b7   :  { %2760 = vtanh.f32 %v1580_v22 }
0x15b8   :  { %v1686_v13 = vpop.permute.xlu0 %1685 }
0x15b9   :  { %v1688_v26 = vadd.f32 %v1686_v13, %v1678_v23 }
0x15bb   :  { %2762 = vtanh.f32 %v1688_v26 }
0x15c1   :  { %v2761_v16 = vpop.eup %2760 }
0x15c2   :  { %1583 = vrot.lane.b32.xlu1 %v2761_v16, %s2808_s24 }
0x15c5   :  { %v2763_v25 = vpop.eup %2762 }
0x15c6   :  { %1691 = vrot.lane.b32.xlu0 %v2763_v25, %s2808_s24 }
0x1634   :  { %v1584_v27 = vpop.permute.xlu1 %1583 }
0x1635   :  { %v1586_v28 = vmul.f32 %v2757_v3, %v1584_v27 }
0x1637   :  { %1700 = vrot.lane.b32.xlu0 %v1586_v28, %s2808_s24 }
0x1638   :  { %v1692_v29 = vpop.permute.xlu0 %1691 }
0x1639   :  { %v1694_v30 = vmul.f32 %v2759_v6, %v1692_v29 }
0x163b   :  { %1696 = vrot.lane.b32.xlu1 %v1694_v30, %s2809_s25 }
0x16a9   :  { %v1701_v24 = vpop.permute.xlu0 %1700 }
0x16ad   :  { %v1697_v31 = vpop.permute.xlu1 %1696 }
0x16ae   :  { %v1703_v33 = vsel %vm89_vm1, %v1697_v31, %v1701_v24 }
0x16af   :  { %2394 = vmatmul.mubr.msk.f32.vlgmr.msra.gmra.mrb[14].mxu1 %vm97_vm2, %v1703_v33 }
0x1782   :  { %v1773_v34 = vpop.f32.mrb[14].mxu1 }
0x1783   :  { %v1774_v32 = vadd.f32 %v2776_v35, %v1773_v34  ;;  %v2395_v36 = vpop.f32.mrb[15].mxu1 }
0x1785   :  { %2764 = vtanh.f32 %v1774_v32  ;;  %v1936_v39 = vmul.f32 -1.442695, %v1774_v32 }
0x1787   :  { %2766 = vpow2.f32 %v1936_v39 }
0x178f   :  { %v2765_v37 = vpop.eup %2764 }
0x1790   :  { %1786 = vrot.lane.b32.xlu1 %v2765_v37, %s2808_s24 }
0x1791   :  { %v2767_v40 = vpop.eup %2766 }
0x1792   :  { %v1780_v41 = vadd.f32 1.0, %v2767_v40 }
0x1794   :  { %2768 = vrcp.f32 %v1780_v41 }
0x179e   :  { %v2769_v38 = vpop.eup %2768 }
0x179f   :  { %v1784_v46 = vmul.f32 %v2769_v38, %v1580_v22 }
0x1802   :  { %v1787_v43 = vpop.permute.xlu1 %1786 }
0x1803   :  { %v1789_v45 = vmul.f32 %v2769_v38, %v1787_v43 }
0x1805   :  { %1791 = vrot.lane.b32.xlu0 %v1789_v45, %s2809_s25 }
0x1877   :  { %v1792_v47 = vpop.permute.xlu0 %1791 }
0x1878   :  { %v1794_v49 = vadd.f32 %v1792_v47, %v1784_v46 }
0x187a   :  { %2770 = vtanh.f32 %v1794_v49 }
0x1884   :  { %v2771_v63 = vpop.eup %2770 }
0x1885   :  { %1797 = vrot.lane.b32.xlu1 %v2771_v63, %s2808_s24 }
0x18f7   :  { %v1798_v42 = vpop.permute.xlu1 %1797 }
0x18f8   :  { %v1800_v1 = vmul.f32 %v2769_v38, %v1798_v42 }
0x18fa   :  { %1802 = vrot.lane.b32.xlu0 %v1800_v1, %s2808_s24 }
0x196c   :  { %v1803_v4 = vpop.permute.xlu0 %1802 }
0x196d   :  { %v1805_v5 = vsel %vm89_vm1, %v1697_v31, %v1803_v4 }
0x196e   :  { %2413 = vmatmul.mubr.msk.f32.vlgmr.msra.gmra.mrb[16].mxu0 %vm97_vm2, %v1805_v5 }
0x1a41   :  { %v1890_v7 = vpop.f32.mrb[16].mxu0 }
0x1a42   :  { %v1891_v12 = vadd.f32 %v1937_v44, %v1890_v7  ;;  %v2414_v8 = vpop.f32.mrb[17].mxu0 }
0x1a44   :  { %1895 = vst.msk [vmem:[%s3356_s9] sm:$0x3] %vm1894_vm3, %v1891_v12 }
0x1a45   :  { %1900 = vsyncpa [#allocation4], 1 }

</bundles_post_ra>
